<compile_context>
chip_gen: v5e
topology: v5e:2x2
jax: 0.10.0
libtpu: 0.0.40
codegen_flags: <defaults>
</compile_context>

<pallas_src>
import functools

import jax
import jax.numpy as jnp
from jax import lax
from jax.experimental import pallas as pl
from jax.experimental.pallas import tpu as pltpu


EXPANSION = 4
BN_EPS = 1e-5
MXU_DTYPE = jnp.bfloat16      # MXU operand dtype (accumulation stays f32)


# --------------------------------------------------------------------------- #
# Fused kernel
# --------------------------------------------------------------------------- #
def _bottleneck_kernel(x_ref, w1_ref, b1_ref, w2_ref, b2_ref, w3_ref, b3_ref,
                       o_ref, h1p_ref, *, stride, shortcut, proj):
    H, W, Cin = x_ref.shape
    Ho, Wo, Cout = o_ref.shape
    planes = w1_ref.shape[1]
    pdt = h1p_ref.dtype

    def sds(start, size):  # strided slice helper (stride handled in-kernel)
        return pl.ds(start, size) if stride == 1 else pl.ds(start, size, stride)

    # ---- stage 1: 1x1 conv (BN scale pre-folded) + bias + ReLU --------------
    x2d = x_ref[...].reshape(H * W, Cin).astype(MXU_DTYPE)
    h1 = jnp.dot(x2d, w1_ref[...], preferred_element_type=jnp.float32)
    h1 = jnp.maximum(h1 + b1_ref[...], 0.0)

    # Zero ONLY the halo strips (interior fully overwritten below).
    # Scratch layout: padded-image column j lives at scratch column j+1, so the
    # interior store lands at even sublane offset 2 (bf16 pack-aligned).
    zrow = jnp.zeros((1, W + 4, planes), pdt)
    h1p_ref[0:1, :, :] = zrow
    h1p_ref[H + 1:H + 2, :, :] = zrow
    zcol = jnp.zeros((H + 2, 2, planes), pdt)
    h1p_ref[:, 0:2, :] = zcol
    h1p_ref[:, W + 2:W + 4, :] = zcol
    h1p_ref[1:H + 1, 2:W + 2, :] = h1.reshape(H, W, planes).astype(pdt)

    # ---- stage 2: 3x3 conv (pad=1, stride in-kernel) as 9 accumulating dots -
    taps = [(dy, dx) for dy in range(3) for dx in range(3)]
    acc = None
    for t, (dy, dx) in enumerate(taps):
        tap = h1p_ref[sds(dy, Ho), sds(dx + 1, Wo), :]
        tap = tap.reshape(Ho * Wo, planes).astype(MXU_DTYPE)
        wt = w2_ref[t * planes:(t + 1) * planes, :]
        d = jnp.dot(tap, wt, preferred_element_type=jnp.float32)
        acc = d if acc is None else acc + d
    h2 = jnp.maximum(acc + b2_ref[...], 0.0).astype(MXU_DTYPE)

    # ---- stage 3: 1x1 conv (+ fused projection shortcut) + bias + ReLU ------
    if shortcut and proj:
        xs = x_ref[sds(0, Ho), sds(0, Wo), :].reshape(Ho * Wo, Cin)
        lhs = jnp.concatenate([h2, xs.astype(MXU_DTYPE)], axis=-1)
    else:
        lhs = h2
    y = jnp.dot(lhs, w3_ref[...], preferred_element_type=jnp.float32) + b3_ref[...]
    if shortcut and not proj:
        # identity shortcut: re-read the (already resident) input block here
        y = y + x_ref[...].reshape(Ho * Wo, Cout).astype(jnp.float32)
    o_ref[...] = jnp.maximum(y, 0.0).reshape(Ho, Wo, Cout).astype(o_ref.dtype)


# --------------------------------------------------------------------------- #
# Parameter setup (deterministic, mirrors the PyTorch __init__ shapes)
# --------------------------------------------------------------------------- #
def init_params(key, in_planes, planes, stride):
    out_planes = EXPANSION * planes
    keys = jax.random.split(key, 8)

    def conv_w(k, cout, cin, kh, kw):  # PyTorch OIHW convention
        fan_in = cin * kh * kw
        return (jax.random.normal(k, (cout, cin, kh, kw), jnp.float32)
                * (2.0 / fan_in) ** 0.5)

    def bn(k, c):
        k1, k2, k3, k4 = jax.random.split(k, 4)
        gamma = 1.0 + 0.1 * jax.random.normal(k1, (c,), jnp.float32)
        beta = 0.1 * jax.random.normal(k2, (c,), jnp.float32)
        mean = 0.1 * jax.random.normal(k3, (c,), jnp.float32)
        var = jnp.abs(jax.random.normal(k4, (c,), jnp.float32)) + 0.5
        return gamma, beta, mean, var

    p = {
        "w1": conv_w(keys[0], planes, in_planes, 1, 1),
        "bn1": bn(keys[1], planes),
        "w2": conv_w(keys[2], planes, planes, 3, 3),
        "bn2": bn(keys[3], planes),
        "w3": conv_w(keys[4], out_planes, planes, 1, 1),
        "bn3": bn(keys[5], out_planes),
    }
    if stride != 1 or in_planes != out_planes:
        p["wsc"] = conv_w(keys[6], out_planes, in_planes, 1, 1)
        p["bnsc"] = bn(keys[7], out_planes)
    return p


def _fold_bn(bn_params):
    gamma, beta, mean, var = bn_params
    scale = gamma / jnp.sqrt(var + BN_EPS)
    bias = beta - mean * scale
    return scale, bias


# --------------------------------------------------------------------------- #
# Bottleneck forward (single fused Pallas call)
# --------------------------------------------------------------------------- #
def bottleneck_forward(x_nchw, params, *, stride=1, shortcut=True):
    N, Cin, H, W = x_nchw.shape
    planes = params["w1"].shape[0]
    Cout = EXPANSION * planes
    Ho = (H - 1) // stride + 1
    Wo = (W - 1) // stride + 1
    proj = (stride != 1) or (Cin != Cout)

    # bf16 activations across the boundary (halved HBM DMA) for stride==1;
    # stride!=1 keeps f32 so the strided subsample reads stay on the 32-bit path.
    act_dtype = MXU_DTYPE if stride == 1 else jnp.float32

    # TODO(synk): keep the whole network NHWC (+bf16) so these boundary
    #             transposes (a full HBM pass each) disappear.
    x = jnp.transpose(x_nchw, (0, 2, 3, 1)).astype(act_dtype)   # NCHW -> NHWC

    # Fold BN scale into the conv weights in f32, then cast to bf16; bias stays f32.
    s1, b1 = _fold_bn(params["bn1"])
    s2, b2 = _fold_bn(params["bn2"])
    s3, b3 = _fold_bn(params["bn3"])
    w1 = (params["w1"][:, :, 0, 0] * s1[:, None]).T.astype(MXU_DTYPE)   # (Cin, planes)
    w2 = (jnp.transpose(params["w2"] * s2[:, None, None, None], (2, 3, 1, 0))
          .reshape(9 * planes, planes).astype(MXU_DTYPE))               # (9*planes, planes)
    w3 = (params["w3"][:, :, 0, 0] * s3[:, None]).T                      # (planes, Cout) f32
    if shortcut and proj:
        ssc, bsc = _fold_bn(params["bnsc"])
        wsc = (params["wsc"][:, :, 0, 0] * ssc[:, None]).T               # (Cin, Cout) f32
        w3 = jnp.concatenate([w3, wsc], axis=0)                          # (planes+Cin, Cout)
        b3 = b3 + bsc
    w3 = w3.astype(MXU_DTYPE)
    K3 = w3.shape[0]
    b1 = b1.reshape(1, planes)
    b2 = b2.reshape(1, planes)
    b3 = b3.reshape(1, Cout)

    kernel = functools.partial(_bottleneck_kernel, stride=stride,
                               shortcut=shortcut, proj=proj)
    out = pl.pallas_call(
        kernel,
        out_shape=jax.ShapeDtypeStruct((N, Ho, Wo, Cout), act_dtype),
        grid_spec=pltpu.PrefetchScalarGridSpec(
            num_scalar_prefetch=0,
            grid=(N,),
            in_specs=[
                pl.BlockSpec((None, H, W, Cin), lambda n: (n, 0, 0, 0)),
                pl.BlockSpec((Cin, planes), lambda n: (0, 0)),
                pl.BlockSpec((1, planes), lambda n: (0, 0)),
                pl.BlockSpec((9 * planes, planes), lambda n: (0, 0)),
                pl.BlockSpec((1, planes), lambda n: (0, 0)),
                pl.BlockSpec((K3, Cout), lambda n: (0, 0)),
                pl.BlockSpec((1, Cout), lambda n: (0, 0)),
            ],
            out_specs=pl.BlockSpec((None, Ho, Wo, Cout), lambda n: (n, 0, 0, 0)),
            scratch_shapes=[pltpu.VMEM((H + 2, W + 4, planes),
                                       MXU_DTYPE if stride == 1 else jnp.float32)],
        ),
        compiler_params=pltpu.CompilerParams(
            dimension_semantics=("parallel",),
            vmem_limit_bytes=64 * 1024 * 1024),
    )(x, w1, b1, w2, b2, w3, b3)
    return jnp.transpose(out, (0, 3, 1, 2)).astype(jnp.float32)  # NHWC -> NCHW


# --------------------------------------------------------------------------- #
# Pure-JAX reference (for correctness check)
# --------------------------------------------------------------------------- #
def reference_forward(x_nchw, params, *, stride=1, shortcut=True):
    x = jnp.transpose(x_nchw, (0, 2, 3, 1)).astype(jnp.float32)
    dn = ("NHWC", "HWIO", "NHWC")
    planes = params["w1"].shape[0]
    out_planes = EXPANSION * planes
    Cin = x.shape[-1]

    def bn(y, prm):
        g, b, m, v = prm
        return (y - m) * (g / jnp.sqrt(v + BN_EPS)) + b

    def to_hwio(w):
        return jnp.transpose(w, (2, 3, 1, 0))

    h = lax.conv_general_dilated(x, to_hwio(params["w1"]), (1, 1), "VALID",
                                 dimension_numbers=dn)
    h = jax.nn.relu(bn(h, params["bn1"]))
    h = lax.conv_general_dilated(h, to_hwio(params["w2"]), (stride, stride),
                                 ((1, 1), (1, 1)), dimension_numbers=dn)
    h = jax.nn.relu(bn(h, params["bn2"]))
    h = lax.conv_general_dilated(h, to_hwio(params["w3"]), (1, 1), "VALID",
                                 dimension_numbers=dn)
    h = bn(h, params["bn3"])
    if shortcut:
        if stride != 1 or Cin != out_planes:
            s = lax.conv_general_dilated(x, to_hwio(params["wsc"]),
                                         (stride, stride), "VALID",
                                         dimension_numbers=dn)
            s = bn(s, params["bnsc"])
        else:
            s = x
        h = h + s
    h = jax.nn.relu(h)
    return jnp.transpose(h, (0, 3, 1, 2))


# --------------------------------------------------------------------------- #
if __name__ == "__main__":
    key = jax.random.PRNGKey(0)

    # (name, N, in_planes, planes, H, W, stride, shortcut)
    configs = [
        ("proj_stride2", 2, 64, 32, 16, 16, 2, True),   # projection shortcut
        ("identity",     2, 128, 32, 16, 16, 1, True),  # identity shortcut
        ("no_shortcut",  2, 64, 32, 16, 16, 1, False),  # shortcut disabled
    ]

    for name, N, in_planes, planes, H, W, stride, shortcut in configs:
        key, kx, kp = jax.random.split(key, 3)
        x = jax.random.normal(kx, (N, in_planes, H, W), jnp.float32)  # NCHW
        params = init_params(kp, in_planes, planes, stride)

        fwd = jax.jit(functools.partial(bottleneck_forward, stride=stride,
                                        shortcut=shortcut))
        out = jax.block_until_ready(fwd(x, params))
        ref = jax.block_until_ready(
            reference_forward(x, params, stride=stride, shortcut=shortcut))

        Ho = (H - 1) // stride + 1
        Wo = (W - 1) // stride + 1
        assert out.shape == (N, EXPANSION * planes, Ho, Wo), (name, out.shape)
        # bf16 activations/weights/output vs f32 reference -> allow a few %.
        err = float(jnp.max(jnp.abs(out - ref))
                    / jnp.maximum(jnp.max(jnp.abs(ref)), 1.0))
        assert err < 4e-2, (name, err)

    print("KERNEL_OK")
</pallas_src>

<mosaic_0001>
module attributes {stable_mosaic.version = 11 : i64} {
  func.func @_bottleneck_kernel(%arg0: i32, %arg1: memref<1x16x16x64xf32, #tpu.memory_space<vmem>>, %arg2: memref<64x32xbf16, #tpu.memory_space<vmem>>, %arg3: memref<1x32xf32, #tpu.memory_space<vmem>>, %arg4: memref<288x32xbf16, #tpu.memory_space<vmem>>, %arg5: memref<1x32xf32, #tpu.memory_space<vmem>>, %arg6: memref<96x128xbf16, #tpu.memory_space<vmem>>, %arg7: memref<1x128xf32, #tpu.memory_space<vmem>>, %arg8: memref<1x8x8x128xf32, #tpu.memory_space<vmem>>, %arg9: memref<18x20x32xf32, #tpu.memory_space<vmem>>) attributes {dimension_semantics = [#tpu.dimension_semantics<parallel>], iteration_bounds = array<i64: 2>, scalar_prefetch = 0 : i64, scratch_operands = 1 : i64, tpu.core_type = #tpu.core_type<tc>, window_params = [{transform_indices = @transform_0, window_bounds = array<i64: 1, 16, 16, 64>}, {pipeline_mode = #tpu.pipeline_mode<synchronous>, transform_indices = @transform_1, window_bounds = array<i64: 64, 32>}, {pipeline_mode = #tpu.pipeline_mode<synchronous>, transform_indices = @transform_2, window_bounds = array<i64: 1, 32>}, {pipeline_mode = #tpu.pipeline_mode<synchronous>, transform_indices = @transform_3, window_bounds = array<i64: 288, 32>}, {pipeline_mode = #tpu.pipeline_mode<synchronous>, transform_indices = @transform_4, window_bounds = array<i64: 1, 32>}, {pipeline_mode = #tpu.pipeline_mode<synchronous>, transform_indices = @transform_5, window_bounds = array<i64: 96, 128>}, {pipeline_mode = #tpu.pipeline_mode<synchronous>, transform_indices = @transform_6, window_bounds = array<i64: 1, 128>}, {transform_indices = @transform_7, window_bounds = array<i64: 1, 8, 8, 128>}]} {
    %c0 = arith.constant 0 : index
    %c0_0 = arith.constant 0 : index
    %c0_1 = arith.constant 0 : index
    %c0_2 = arith.constant 0 : index
    %0 = vector.load %arg1[%c0, %c0_0, %c0_1, %c0_2] : memref<1x16x16x64xf32, #tpu.memory_space<vmem>>, vector<1x16x16x64xf32>
    %1 = vector.shape_cast %0 : vector<1x16x16x64xf32> to vector<16x16x64xf32>
    %2 = vector.shape_cast %1 : vector<16x16x64xf32> to vector<256x64xf32>
    %3 = arith.truncf %2 : vector<256x64xf32> to vector<256x64xbf16>
    %c0_3 = arith.constant 0 : index
    %c0_4 = arith.constant 0 : index
    %4 = vector.load %arg2[%c0_3, %c0_4] : memref<64x32xbf16, #tpu.memory_space<vmem>>, vector<64x32xbf16>
    %cst = arith.constant dense<0.000000e+00> : vector<256x32xf32>
    %5 = tpu.matmul %3, %4, %cst {dimension_numbers = #tpu.dot_dimension_numbers<[1], [0], [0], [1], [0, 0, 1, 1], [], []>} : vector<256x64xbf16>, vector<64x32xbf16>, vector<256x32xf32> -> vector<256x32xf32>
    %c0_5 = arith.constant 0 : index
    %c0_6 = arith.constant 0 : index
    %6 = vector.load %arg3[%c0_5, %c0_6] : memref<1x32xf32, #tpu.memory_space<vmem>>, vector<1x32xf32>
    %7 = vector.broadcast %6 : vector<1x32xf32> to vector<256x32xf32>
    %8 = arith.addf %5, %7 : vector<256x32xf32>
    %cst_7 = arith.constant 0.000000e+00 : f32
    %9 = vector.broadcast %cst_7 : f32 to vector<256x32xf32>
    %10 = arith.maximumf %8, %9 : vector<256x32xf32>
    %cst_8 = arith.constant 0.000000e+00 : f32
    %11 = vector.broadcast %cst_8 : f32 to vector<1x20x32xf32>
    %c0_9 = arith.constant 0 : index
    %c0_10 = arith.constant 0 : index
    %c0_11 = arith.constant 0 : index
    %12 = vector.load %arg9[%c0_9, %c0_10, %c0_11] : memref<18x20x32xf32, #tpu.memory_space<vmem>>, vector<1x20x32xf32>
    tpu.vector_store %arg9[%c0_9, %c0_10, %c0_11], %11 {strides = array<i32>} : memref<18x20x32xf32, #tpu.memory_space<vmem>>, vector<1x20x32xf32>,
    %c17 = arith.constant 17 : index
    %c0_12 = arith.constant 0 : index
    %c0_13 = arith.constant 0 : index
    %13 = vector.load %arg9[%c17, %c0_12, %c0_13] : memref<18x20x32xf32, #tpu.memory_space<vmem>>, vector<1x20x32xf32>
    tpu.vector_store %arg9[%c17, %c0_12, %c0_13], %11 {strides = array<i32>} : memref<18x20x32xf32, #tpu.memory_space<vmem>>, vector<1x20x32xf32>,
    %cst_14 = arith.constant 0.000000e+00 : f32
    %14 = vector.broadcast %cst_14 : f32 to vector<18x2x32xf32>
    %c0_15 = arith.constant 0 : index
    %c0_16 = arith.constant 0 : index
    %c0_17 = arith.constant 0 : index
    %15 = vector.load %arg9[%c0_15, %c0_16, %c0_17] : memref<18x20x32xf32, #tpu.memory_space<vmem>>, vector<18x2x32xf32>
    tpu.vector_store %arg9[%c0_15, %c0_16, %c0_17], %14 {strides = array<i32>} : memref<18x20x32xf32, #tpu.memory_space<vmem>>, vector<18x2x32xf32>,
    %c0_18 = arith.constant 0 : index
    %c18 = arith.constant 18 : index
    %c0_19 = arith.constant 0 : index
    %16 = vector.load %arg9[%c0_18, %c18, %c0_19] : memref<18x20x32xf32, #tpu.memory_space<vmem>>, vector<18x2x32xf32>
    tpu.vector_store %arg9[%c0_18, %c18, %c0_19], %14 {strides = array<i32>} : memref<18x20x32xf32, #tpu.memory_space<vmem>>, vector<18x2x32xf32>,
    %17 = vector.shape_cast %10 : vector<256x32xf32> to vector<16x16x32xf32>
    %c1 = arith.constant 1 : index
    %c2 = arith.constant 2 : index
    %c0_20 = arith.constant 0 : index
    %18 = vector.load %arg9[%c1, %c2, %c0_20] : memref<18x20x32xf32, #tpu.memory_space<vmem>>, vector<16x16x32xf32>
    tpu.vector_store %arg9[%c1, %c2, %c0_20], %17 {strides = array<i32>} : memref<18x20x32xf32, #tpu.memory_space<vmem>>, vector<16x16x32xf32>,
    %c0_21 = arith.constant 0 : index
    %c1_22 = arith.constant 1 : index
    %c0_23 = arith.constant 0 : index
    %19 = tpu.strided_load %arg9[%c0_21, %c1_22, %c0_23] {strides = array<i32: 2, 2, 1>} : memref<18x20x32xf32, #tpu.memory_space<vmem>>, vector<8x8x32xf32>
    %20 = vector.shape_cast %19 : vector<8x8x32xf32> to vector<64x32xf32>
    %21 = arith.truncf %20 : vector<64x32xf32> to vector<64x32xbf16>
    %c0_24 = arith.constant 0 : index
    %c0_25 = arith.constant 0 : index
    %22 = vector.load %arg4[%c0_24, %c0_25] : memref<288x32xbf16, #tpu.memory_space<vmem>>, vector<32x32xbf16>
    %cst_26 = arith.constant dense<0.000000e+00> : vector<64x32xf32>
    %23 = tpu.matmul %21, %22, %cst_26 {dimension_numbers = #tpu.dot_dimension_numbers<[1], [0], [0], [1], [0, 0, 1, 1], [], []>} : vector<64x32xbf16>, vector<32x32xbf16>, vector<64x32xf32> -> vector<64x32xf32>
    %c0_27 = arith.constant 0 : index
    %c2_28 = arith.constant 2 : index
    %c0_29 = arith.constant 0 : index
    %24 = tpu.strided_load %arg9[%c0_27, %c2_28, %c0_29] {strides = array<i32: 2, 2, 1>} : memref<18x20x32xf32, #tpu.memory_space<vmem>>, vector<8x8x32xf32>
    %25 = vector.shape_cast %24 : vector<8x8x32xf32> to vector<64x32xf32>
    %26 = arith.truncf %25 : vector<64x32xf32> to vector<64x32xbf16>
    %c32 = arith.constant 32 : index
    %c0_30 = arith.constant 0 : index
    %27 = vector.load %arg4[%c32, %c0_30] : memref<288x32xbf16, #tpu.memory_space<vmem>>, vector<32x32xbf16>
    %cst_31 = arith.constant dense<0.000000e+00> : vector<64x32xf32>
    %28 = tpu.matmul %26, %27, %cst_31 {dimension_numbers = #tpu.dot_dimension_numbers<[1], [0], [0], [1], [0, 0, 1, 1], [], []>} : vector<64x32xbf16>, vector<32x32xbf16>, vector<64x32xf32> -> vector<64x32xf32>
    %29 = arith.addf %23, %28 : vector<64x32xf32>
    %c0_32 = arith.constant 0 : index
    %c3 = arith.constant 3 : index
    %c0_33 = arith.constant 0 : index
    %30 = tpu.strided_load %arg9[%c0_32, %c3, %c0_33] {strides = array<i32: 2, 2, 1>} : memref<18x20x32xf32, #tpu.memory_space<vmem>>, vector<8x8x32xf32>
    %31 = vector.shape_cast %30 : vector<8x8x32xf32> to vector<64x32xf32>
    %32 = arith.truncf %31 : vector<64x32xf32> to vector<64x32xbf16>
    %c64 = arith.constant 64 : index
    %c0_34 = arith.constant 0 : index
    %33 = vector.load %arg4[%c64, %c0_34] : memref<288x32xbf16, #tpu.memory_space<vmem>>, vector<32x32xbf16>
    %cst_35 = arith.constant dense<0.000000e+00> : vector<64x32xf32>
    %34 = tpu.matmul %32, %33, %cst_35 {dimension_numbers = #tpu.dot_dimension_numbers<[1], [0], [0], [1], [0, 0, 1, 1], [], []>} : vector<64x32xbf16>, vector<32x32xbf16>, vector<64x32xf32> -> vector<64x32xf32>
    %35 = arith.addf %29, %34 : vector<64x32xf32>
    %c1_36 = arith.constant 1 : index
    %c1_37 = arith.constant 1 : index
    %c0_38 = arith.constant 0 : index
    %36 = tpu.strided_load %arg9[%c1_36, %c1_37, %c0_38] {strides = array<i32: 2, 2, 1>} : memref<18x20x32xf32, #tpu.memory_space<vmem>>, vector<8x8x32xf32>
    %37 = vector.shape_cast %36 : vector<8x8x32xf32> to vector<64x32xf32>
    %38 = arith.truncf %37 : vector<64x32xf32> to vector<64x32xbf16>
    %c96 = arith.constant 96 : index
    %c0_39 = arith.constant 0 : index
    %39 = vector.load %arg4[%c96, %c0_39] : memref<288x32xbf16, #tpu.memory_space<vmem>>, vector<32x32xbf16>
    %cst_40 = arith.constant dense<0.000000e+00> : vector<64x32xf32>
    %40 = tpu.matmul %38, %39, %cst_40 {dimension_numbers = #tpu.dot_dimension_numbers<[1], [0], [0], [1], [0, 0, 1, 1], [], []>} : vector<64x32xbf16>, vector<32x32xbf16>, vector<64x32xf32> -> vector<64x32xf32>
    %41 = arith.addf %35, %40 : vector<64x32xf32>
    %c1_41 = arith.constant 1 : index
    %c2_42 = arith.constant 2 : index
    %c0_43 = arith.constant 0 : index
    %42 = tpu.strided_load %arg9[%c1_41, %c2_42, %c0_43] {strides = array<i32: 2, 2, 1>} : memref<18x20x32xf32, #tpu.memory_space<vmem>>, vector<8x8x32xf32>
    %43 = vector.shape_cast %42 : vector<8x8x32xf32> to vector<64x32xf32>
    %44 = arith.truncf %43 : vector<64x32xf32> to vector<64x32xbf16>
    %c128 = arith.constant 128 : index
    %c0_44 = arith.constant 0 : index
    %45 = vector.load %arg4[%c128, %c0_44] : memref<288x32xbf16, #tpu.memory_space<vmem>>, vector<32x32xbf16>
    %cst_45 = arith.constant dense<0.000000e+00> : vector<64x32xf32>
    %46 = tpu.matmul %44, %45, %cst_45 {dimension_numbers = #tpu.dot_dimension_numbers<[1], [0], [0], [1], [0, 0, 1, 1], [], []>} : vector<64x32xbf16>, vector<32x32xbf16>, vector<64x32xf32> -> vector<64x32xf32>
    %47 = arith.addf %41, %46 : vector<64x32xf32>
    %c1_46 = arith.constant 1 : index
    %c3_47 = arith.constant 3 : index
    %c0_48 = arith.constant 0 : index
    %48 = tpu.strided_load %arg9[%c1_46, %c3_47, %c0_48] {strides = array<i32: 2, 2, 1>} : memref<18x20x32xf32, #tpu.memory_space<vmem>>, vector<8x8x32xf32>
    %49 = vector.shape_cast %48 : vector<8x8x32xf32> to vector<64x32xf32>
    %50 = arith.truncf %49 : vector<64x32xf32> to vector<64x32xbf16>
    %c160 = arith.constant 160 : index
    %c0_49 = arith.constant 0 : index
    %51 = vector.load %arg4[%c160, %c0_49] : memref<288x32xbf16, #tpu.memory_space<vmem>>, vector<32x32xbf16>
    %cst_50 = arith.constant dense<0.000000e+00> : vector<64x32xf32>
    %52 = tpu.matmul %50, %51, %cst_50 {dimension_numbers = #tpu.dot_dimension_numbers<[1], [0], [0], [1], [0, 0, 1, 1], [], []>} : vector<64x32xbf16>, vector<32x32xbf16>, vector<64x32xf32> -> vector<64x32xf32>
    %53 = arith.addf %47, %52 : vector<64x32xf32>
    %c2_51 = arith.constant 2 : index
    %c1_52 = arith.constant 1 : index
    %c0_53 = arith.constant 0 : index
    %54 = tpu.strided_load %arg9[%c2_51, %c1_52, %c0_53] {strides = array<i32: 2, 2, 1>} : memref<18x20x32xf32, #tpu.memory_space<vmem>>, vector<8x8x32xf32>
    %55 = vector.shape_cast %54 : vector<8x8x32xf32> to vector<64x32xf32>
    %56 = arith.truncf %55 : vector<64x32xf32> to vector<64x32xbf16>
    %c192 = arith.constant 192 : index
    %c0_54 = arith.constant 0 : index
    %57 = vector.load %arg4[%c192, %c0_54] : memref<288x32xbf16, #tpu.memory_space<vmem>>, vector<32x32xbf16>
    %cst_55 = arith.constant dense<0.000000e+00> : vector<64x32xf32>
    %58 = tpu.matmul %56, %57, %cst_55 {dimension_numbers = #tpu.dot_dimension_numbers<[1], [0], [0], [1], [0, 0, 1, 1], [], []>} : vector<64x32xbf16>, vector<32x32xbf16>, vector<64x32xf32> -> vector<64x32xf32>
    %59 = arith.addf %53, %58 : vector<64x32xf32>
    %c2_56 = arith.constant 2 : index
    %c2_57 = arith.constant 2 : index
    %c0_58 = arith.constant 0 : index
    %60 = tpu.strided_load %arg9[%c2_56, %c2_57, %c0_58] {strides = array<i32: 2, 2, 1>} : memref<18x20x32xf32, #tpu.memory_space<vmem>>, vector<8x8x32xf32>
    %61 = vector.shape_cast %60 : vector<8x8x32xf32> to vector<64x32xf32>
    %62 = arith.truncf %61 : vector<64x32xf32> to vector<64x32xbf16>
    %c224 = arith.constant 224 : index
    %c0_59 = arith.constant 0 : index
    %63 = vector.load %arg4[%c224, %c0_59] : memref<288x32xbf16, #tpu.memory_space<vmem>>, vector<32x32xbf16>
    %cst_60 = arith.constant dense<0.000000e+00> : vector<64x32xf32>
    %64 = tpu.matmul %62, %63, %cst_60 {dimension_numbers = #tpu.dot_dimension_numbers<[1], [0], [0], [1], [0, 0, 1, 1], [], []>} : vector<64x32xbf16>, vector<32x32xbf16>, vector<64x32xf32> -> vector<64x32xf32>
    %65 = arith.addf %59, %64 : vector<64x32xf32>
    %c2_61 = arith.constant 2 : index
    %c3_62 = arith.constant 3 : index
    %c0_63 = arith.constant 0 : index
    %66 = tpu.strided_load %arg9[%c2_61, %c3_62, %c0_63] {strides = array<i32: 2, 2, 1>} : memref<18x20x32xf32, #tpu.memory_space<vmem>>, vector<8x8x32xf32>
    %67 = vector.shape_cast %66 : vector<8x8x32xf32> to vector<64x32xf32>
    %68 = arith.truncf %67 : vector<64x32xf32> to vector<64x32xbf16>
    %c256 = arith.constant 256 : index
    %c0_64 = arith.constant 0 : index
    %69 = vector.load %arg4[%c256, %c0_64] : memref<288x32xbf16, #tpu.memory_space<vmem>>, vector<32x32xbf16>
    %cst_65 = arith.constant dense<0.000000e+00> : vector<64x32xf32>
    %70 = tpu.matmul %68, %69, %cst_65 {dimension_numbers = #tpu.dot_dimension_numbers<[1], [0], [0], [1], [0, 0, 1, 1], [], []>} : vector<64x32xbf16>, vector<32x32xbf16>, vector<64x32xf32> -> vector<64x32xf32>
    %71 = arith.addf %65, %70 : vector<64x32xf32>
    %c0_66 = arith.constant 0 : index
    %c0_67 = arith.constant 0 : index
    %72 = vector.load %arg5[%c0_66, %c0_67] : memref<1x32xf32, #tpu.memory_space<vmem>>, vector<1x32xf32>
    %73 = vector.broadcast %72 : vector<1x32xf32> to vector<64x32xf32>
    %74 = arith.addf %71, %73 : vector<64x32xf32>
    %cst_68 = arith.constant 0.000000e+00 : f32
    %75 = vector.broadcast %cst_68 : f32 to vector<64x32xf32>
    %76 = arith.maximumf %74, %75 : vector<64x32xf32>
    %77 = arith.truncf %76 : vector<64x32xf32> to vector<64x32xbf16>
    %c0_69 = arith.constant 0 : index
    %c0_70 = arith.constant 0 : index
    %c0_71 = arith.constant 0 : index
    %c0_72 = arith.constant 0 : index
    %78 = tpu.strided_load %arg1[%c0_69, %c0_70, %c0_71, %c0_72] {strides = array<i32: 1, 2, 2, 1>} : memref<1x16x16x64xf32, #tpu.memory_space<vmem>>, vector<1x8x8x64xf32>
    %79 = vector.shape_cast %78 : vector<1x8x8x64xf32> to vector<8x8x64xf32>
    %80 = vector.shape_cast %79 : vector<8x8x64xf32> to vector<64x64xf32>
    %81 = arith.truncf %80 : vector<64x64xf32> to vector<64x64xbf16>
    %82 = tpu.concatenate %77, %81 in 1 : vector<64x32xbf16>, vector<64x64xbf16> -> vector<64x96xbf16>
    %c0_73 = arith.constant 0 : index
    %c0_74 = arith.constant 0 : index
    %83 = vector.load %arg6[%c0_73, %c0_74] : memref<96x128xbf16, #tpu.memory_space<vmem>>, vector<96x128xbf16>
    %cst_75 = arith.constant dense<0.000000e+00> : vector<64x128xf32>
    %84 = tpu.matmul %82, %83, %cst_75 {dimension_numbers = #tpu.dot_dimension_numbers<[1], [0], [0], [1], [0, 0, 1, 1], [], []>} : vector<64x96xbf16>, vector<96x128xbf16>, vector<64x128xf32> -> vector<64x128xf32>
    %c0_76 = arith.constant 0 : index
    %c0_77 = arith.constant 0 : index
    %85 = vector.load %arg7[%c0_76, %c0_77] : memref<1x128xf32, #tpu.memory_space<vmem>>, vector<1x128xf32>
    %86 = vector.broadcast %85 : vector<1x128xf32> to vector<64x128xf32>
    %87 = arith.addf %84, %86 : vector<64x128xf32>
    %cst_78 = arith.constant 0.000000e+00 : f32
    %88 = vector.broadcast %cst_78 : f32 to vector<64x128xf32>
    %89 = arith.maximumf %87, %88 : vector<64x128xf32>
    %90 = vector.shape_cast %89 : vector<64x128xf32> to vector<8x8x128xf32>
    %c0_79 = arith.constant 0 : index
    %c0_80 = arith.constant 0 : index
    %c0_81 = arith.constant 0 : index
    %c0_82 = arith.constant 0 : index
    %91 = vector.load %arg8[%c0_79, %c0_80, %c0_81, %c0_82] : memref<1x8x8x128xf32, #tpu.memory_space<vmem>>, vector<1x8x8x128xf32>
    %92 = vector.shape_cast %91 : vector<1x8x8x128xf32> to vector<8x8x128xf32>
    %93 = vector.shape_cast %90 : vector<8x8x128xf32> to vector<1x8x8x128xf32>
    tpu.vector_store %arg8[%c0_79, %c0_80, %c0_81, %c0_82], %93 {strides = array<i32>} : memref<1x8x8x128xf32, #tpu.memory_space<vmem>>, vector<1x8x8x128xf32>,
    return
  }
  func.func @transform_0(%arg0: i32) -> (i32, i32, i32, i32) {
    %c0_i32 = arith.constant 0 : i32
    %c0_i32_0 = arith.constant 0 : i32
    %c0_i32_1 = arith.constant 0 : i32
    %c0_i32_2 = arith.constant 0 : i32
    return %arg0, %c0_i32, %c0_i32_0, %c0_i32_1 : i32, i32, i32, i32
  }
  func.func @transform_1(%arg0: i32) -> (i32, i32) {
    %c0_i32 = arith.constant 0 : i32
    %c0_i32_0 = arith.constant 0 : i32
    %c0_i32_1 = arith.constant 0 : i32
    return %c0_i32, %c0_i32_0 : i32, i32
  }
  func.func @transform_2(%arg0: i32) -> (i32, i32) {
    %c0_i32 = arith.constant 0 : i32
    %c0_i32_0 = arith.constant 0 : i32
    %c0_i32_1 = arith.constant 0 : i32
    return %c0_i32, %c0_i32_0 : i32, i32
  }
  func.func @transform_3(%arg0: i32) -> (i32, i32) {
    %c0_i32 = arith.constant 0 : i32
    %c0_i32_0 = arith.constant 0 : i32
    %c0_i32_1 = arith.constant 0 : i32
    return %c0_i32, %c0_i32_0 : i32, i32
  }
  func.func @transform_4(%arg0: i32) -> (i32, i32) {
    %c0_i32 = arith.constant 0 : i32
    %c0_i32_0 = arith.constant 0 : i32
    %c0_i32_1 = arith.constant 0 : i32
    return %c0_i32, %c0_i32_0 : i32, i32
  }
  func.func @transform_5(%arg0: i32) -> (i32, i32) {
    %c0_i32 = arith.constant 0 : i32
    %c0_i32_0 = arith.constant 0 : i32
    %c0_i32_1 = arith.constant 0 : i32
    return %c0_i32, %c0_i32_0 : i32, i32
  }
  func.func @transform_6(%arg0: i32) -> (i32, i32) {
    %c0_i32 = arith.constant 0 : i32
    %c0_i32_0 = arith.constant 0 : i32
    %c0_i32_1 = arith.constant 0 : i32
    return %c0_i32, %c0_i32_0 : i32, i32
  }
  func.func @transform_7(%arg0: i32) -> (i32, i32, i32, i32) {
    %c0_i32 = arith.constant 0 : i32
    %c0_i32_0 = arith.constant 0 : i32
    %c0_i32_1 = arith.constant 0 : i32
    %c0_i32_2 = arith.constant 0 : i32
    return %arg0, %c0_i32, %c0_i32_0, %c0_i32_1 : i32, i32, i32, i32
  }
}

</mosaic_0001>

<bundles_post_ra>
// kernel: bottleneck_forward.1
= control target key start
LH: loop header
LB: loop body
LE: loop exit
PB: predicated region body
PF: predicated region fallthrough
CT: control target
= control target key end

     0   :  { %12 = vsyncpa [#allocation4], 0  ;;  %s2558_s0 = inlined_call_operand.vmem [shape: f32[2,16,16,64], index: 0, kind: input, shape index: {}]   ;;  %s2559_s1 = inlined_call_operand.vmem [shape: bf16[64,32], index: 1, kind: input, shape index: {}]   ;;  %s2560_s2 = inlined_call_operand.vmem [shape: f32[1,32], index: 2, kind: input, shape index: {}]   ;;  %s2561_s3 = inlined_call_operand.vmem [shape: bf16[288,32], index: 3, kind: input, shape index: {}]   ;;  %s2562_s4 = inlined_call_operand.vmem [shape: f32[1,32], index: 4, kind: input, shape index: {}]   ;;  %s2563_s5 = inlined_call_operand.vmem [shape: bf16[96,128], index: 5, kind: input, shape index: {}]   ;;  %s2564_s6 = inlined_call_operand.vmem [shape: f32[1,128], index: 6, kind: input, shape index: {}]   ;;  %s2565_s7 = inlined_call_operand.hbm [shape: f32[2,8,8,128], index: 7, kind: output, shape index: {}]  }
   0x1   :  { %14 = vsyncpa [#allocation4 + $0x1], 0  ;;  %s2081_s24 = smov 0   ;;  %s2083_s25 = smov 0  }
   0x2   :  { %s2085_s26 = smov 0   ;;  %s2087_s27 = smov 0  }
   0x3 LB: > { %s2102_s28 = sadd.s32 4294967295, %s2035_s27   ;;  %s1704_s29 = sadd.s32 4294967294, %s2035_s27   ;;  %s2035_s27 = sphi %s2087_s27, %s2571_s27   ;;  %s2031_s26 = sphi %s2085_s26, %s2570_s26   ;;  %s2027_s25 = sphi %s2083_s25, %s2569_s25   ;;  %s2023_s24 = sphi %s2081_s24, %s2568_s24  }
   0x4   : > { %s2106_s30 = sadd.s32 1, %s2035_s27   ;;  %s179_s8 = sadd.s32 1, %s2031_s26 }
   0x5   : > { %s176_s9 = ssub.s32 %s2035_s27, %s2106_s30  ;;  %p189_p0 = scmp.ne.s32.totalorder %s2031_s26, %s2027_s25 }
   0x6   : > { %p177_p1 = scmp.eq.s32.totalorder %s176_s9, 0  ;;  %p190_p2 = scmp.eq.s32.totalorder %s2102_s28, 1 }
   0x7   : > { %p195_p3 = scmp.ne.s32.totalorder %s2027_s25, %s2023_s24  ;;  %p196_p4 = scmp.eq.s32.totalorder %s1704_s29, 1 }
   0x8   : > { %s2117_s10 = scalar_select %p177_p1, %s2031_s26, %s179_s8  }
   0x9   : > { %p2119_p5 = por %p190_p2, %p189_p0  ;;  %p2123_p6 = por %p196_p4, %p195_p3 }
   0xa   : > { %p1707_p7 = scmp.ge.s32.totalorder %s2035_s27, 1  ;;  %p240_p8 = scmp.lt.s32.totalorder %s2035_s27, 3 }
   0xc   : > { %p241_p9 = pnand %p1707_p7, %p240_p8 }
   0xd   : > { %p272_p10 = scmp.lt.s32.totalorder (!%p241_p9), %s2102_s28, 1  ;;  %s2038_s8 = smov (!%p241_p9), 32  }
   0xe   : > { %244 = sbr.rel (%p241_p9) target bundleno = 847 (0x34f), region = 48  ;;  %s1920_s16 = sshll.u32 (!%p241_p9), %s2102_s28, 6 }
   0xf   : > { %s1590_s19 = scalar_lea.hbm (!%p241_p9), %s2565_s7, %s1920_s16  ;;  %s1993_s13 = scalar_lea.hbm (!%p241_p9), %s2565_s7, 128 }
  0x10   : > { %s1593_s21 = sshll.u32 (!%p241_p9), %s1590_s19, 4  ;;  %s1594_s21 = int_to_ptr.hbm [resolvable:$true] %s1593_s21 }
  0x11   : > { %s1987_s29 = sshra.s32 (!%p241_p9), %s1594_s21, 4  ;;  %s1988_s29 = int_to_ptr.hbm [resolvable:$true] %s1987_s29 }
  0x12   : > { %p1994_p0 = scmp.lt.s32.totalorder (!%p241_p9), %s1988_s29, %s2565_s7 }
  0x13   : > { %v1895_v0 = vld [vmem:[%s2559_s1 + $0x18] sm:$0xff]  ;;  %v1894_v1 = vld [vmem:[%s2559_s1 + $0x10] sm:$0xff]  ;;  %s273_s17 = scalar_select %p272_p10, %s2102_s28, 1  ;;  %v1893_v2 = vld [vmem:[%s2559_s1 + $0x8] sm:$0xff]  ;;  %vm362_vm0 = vcmask 523264   ;;  %vm532_vm1 = vcmask 261120  }
  0x14   : > { %415 = vmatpush.bf16.msra.mxu0 %v1895_v0  ;;  %1921 = vmatpush.bf16.msra.mxu2 %v1895_v0  ;;  %v1892_v3 = vld [vmem:[%s2559_s1] sm:$0xff]  ;;  %v2037_v30 = vmov 0.0   ;;  %vm541_vm2 = vcmask 254976   ;;  %vm535_vm3 = vcmask 257024   ;;  %v1899_v38 = vld [vmem:[%s2561_s3 + $0x18] sm:$0xff]  ;;  %v1897_v39 = vld [vmem:[%s2561_s3 + $0x8] sm:$0xff] }
  0x15   : > { %s1891_s18 = sshll.u32 %s273_s17, 8  ;;  %533 = vst.msk [vmem:[#allocation2] sm:$0xff] %vm532_vm1, %v2037_v30  ;;  %v2187_v37 = vld [vmem:[%s2560_s2] ss:$0 sm:$0xff]  ;;  %v1901_v40 = vld [vmem:[%s2561_s3 + $0x28] sm:$0xff]  ;;  %689 = vmatpush.bf16.msra.mxu1 %v1899_v38  ;;  %v1898_v44 = vld [vmem:[%s2561_s3 + $0x10] sm:$0xff] }
  0x16   : > { %s2143_s23 = scalar_lea.vmem %s2558_s0, %s1891_s18  ;;  %534 = vst.msk [vmem:[#allocation2 + $0x8] sm:$0xff] %vm532_vm1, %v2037_v30  ;;  %819 = vmatpush.bf16.msra.mxu3 %v1901_v40  ;;  %v1896_v45 = vld [vmem:[%s2561_s3] sm:$0xff]  ;;  %vm1524_vm4 = vcmask 785408   ;;  %s1989_s28 = scalar_lea.hbm %s1988_s29, 64 }
  0x17   : > { %v278_v4 = vld [vmem:[%s2143_s23] sm:$0xff]  ;;  %v279_v5 = vld [vmem:[%s2143_s23 + $0x8] sm:$0xff]  ;;  %v280_v7 = vld [vmem:[%s2143_s23 + $0x10] sm:$0xff]  ;;  %536 = vst.msk [vmem:[#allocation2 + $0x10] sm:$0xf] %vm535_vm3, %v2037_v30  ;;  %p1990_p11 = scmp.ne.s32.totalorder %s1988_s29, %s1989_s28  ;;  %p1995_p1 = scmp.lt.s32.totalorder %s1993_s13, %s1989_s28 }
  0x18   : > { %416 = vmatpush.bf16.msra.mxu0 %v1894_v1  ;;  %1922 = vmatpush.bf16.msra.mxu2 %v1894_v1  ;;  %v310_v6 = vpack.c.bf16 %v279_v5, %v278_v4  ;;  %v281_v8 = vld [vmem:[%s2143_s23 + $0x18] sm:$0xff]  ;;  %v282_v10 = vld [vmem:[%s2143_s23 + $0x20] sm:$0xff]  ;;  %v283_v11 = vld [vmem:[%s2143_s23 + $0x28] sm:$0xff]  ;;  %542 = vst.msk [vmem:[#allocation2] sm:$0x3] %vm541_vm2, %v2037_v30 }
  0x19   : > { %v311_v9 = vpack.c.bf16 %v281_v8, %v280_v7  ;;  %v312_v12 = vpack.c.bf16 %v283_v11, %v282_v10  ;;  %v284_v13 = vld [vmem:[%s2143_s23 + $0x30] sm:$0xff]  ;;  %v285_v14 = vld [vmem:[%s2143_s23 + $0x38] sm:$0xff]  ;;  %v286_v16 = vld [vmem:[%s2143_s23 + $0x40] sm:$0xff]  ;;  %690 = vmatpush.bf16.msra.mxu1 %v1898_v44  ;;  %543 = vst.msk [vmem:[#allocation2 + $0x18] sm:$0x3] %vm541_vm2, %v2037_v30  ;;  %p1991_p12 = pnand %p1990_p11, %p2119_p5  ;;  %p1996_p2 = por %p1995_p1, %p1994_p0 }
  0x1a   : > { %v313_v15 = vpack.c.bf16 %v285_v14, %v284_v13  ;;  %v287_v17 = vld [vmem:[%s2143_s23 + $0x48] sm:$0xff]  ;;  %v288_v19 = vld [vmem:[%s2143_s23 + $0x50] sm:$0xff]  ;;  %v289_v20 = vld [vmem:[%s2143_s23 + $0x58] sm:$0xff]  ;;  %544 = vst.msk [vmem:[#allocation2 + $0x30] sm:$0x3] %vm541_vm2, %v2037_v30 }
  0x1b   : > { %v314_v18 = vpack.c.bf16 %v287_v17, %v286_v16  ;;  %v315_v21 = vpack.c.bf16 %v289_v20, %v288_v19  ;;  %v290_v22 = vld [vmem:[%s2143_s23 + $0x60] sm:$0xff]  ;;  %v291_v23 = vld [vmem:[%s2143_s23 + $0x68] sm:$0xff]  ;;  %v292_v28 = vld [vmem:[%s2143_s23 + $0x70] sm:$0xff]  ;;  %545 = vst.msk [vmem:[#allocation2 + $0x48] sm:$0x3] %vm541_vm2, %v2037_v30  ;;  %p1992_p13 = pneg %p1991_p12 }
  0x1c   : > { %417 = vmatpush.bf16.msra.mxu0 %v1893_v2  ;;  %1923 = vmatpush.bf16.msra.mxu2 %v1893_v2  ;;  %v316_v24 = vpack.c.bf16 %v291_v23, %v290_v22  ;;  %v306_v25 = vld [vmem:[%s2143_s23 + $0xe0] sm:$0xff]  ;;  %v307_v26 = vld [vmem:[%s2143_s23 + $0xe8] sm:$0xff]  ;;  %v293_v29 = vld [vmem:[%s2143_s23 + $0x78] sm:$0xff]  ;;  %546 = vst.msk [vmem:[#allocation2 + $0x60] sm:$0x3] %vm541_vm2, %v2037_v30 }
  0x1d   : > { %v324_v27 = vpack.c.bf16 %v307_v26, %v306_v25  ;;  %v317_v31 = vpack.c.bf16 %v293_v29, %v292_v28  ;;  %v308_v32 = vld [vmem:[%s2143_s23 + $0xf0] sm:$0xff]  ;;  %v309_v33 = vld [vmem:[%s2143_s23 + $0xf8] sm:$0xff]  ;;  %v294_v35 = vld [vmem:[%s2143_s23 + $0x80] sm:$0xff]  ;;  %547 = vst.msk [vmem:[#allocation2 + $0x78] sm:$0x3] %vm541_vm2, %v2037_v30  ;;  %p1997_p3 = pnand %p1996_p2, %p1992_p13 }
  0x1e   : > { %v325_v34 = vpack.c.bf16 %v309_v33, %v308_v32  ;;  %v295_v36 = vld [vmem:[%s2143_s23 + $0x88] sm:$0xff]  ;;  %v1900_v46 = vld [vmem:[%s2561_s3 + $0x20] sm:$0xff]  ;;  %v296_v51 = vld [vmem:[%s2143_s23 + $0x90] sm:$0xff]  ;;  %548 = vst.msk [vmem:[#allocation2 + $0x90] sm:$0x3] %vm541_vm2, %v2037_v30 }
  0x1f   : > { %v318_v41 = vpack.c.bf16 %v295_v36, %v294_v35  ;;  %820 = vmatpush.bf16.msra.mxu3 %v1900_v46  ;;  %v297_v52 = vld [vmem:[%s2143_s23 + $0x98] sm:$0xff]  ;;  %549 = vst.msk [vmem:[#allocation2 + $0xa8] sm:$0x3] %vm541_vm2, %v2037_v30  ;;  %v298_v60 = vld [vmem:[%s2143_s23 + $0xa0] sm:$0xff]  ;;  %v299_v61 = vld [vmem:[%s2143_s23 + $0xa8] sm:$0xff] }
  0x20   : > { %418 = vmatpush.bf16.msra.mxu0 %v1892_v3  ;;  %1924 = vmatpush.bf16.msra.mxu2 %v1892_v3  ;;  %v319_v53 = vpack.c.bf16 %v297_v52, %v296_v51  ;;  %550 = vst.msk [vmem:[#allocation2 + $0xc0] sm:$0x3] %vm541_vm2, %v2037_v30  ;;  %v320_v62 = vpack.c.bf16 %v299_v61, %v298_v60  ;;  %v636_v1 = vld [vmem:[#allocation2 + $0x2] ss:$2 sm:$0xff]  ;;  %v612_v2 = vld [vmem:[#allocation2 + $0x1] ss:$2 sm:$0xff] }
  0x21   : > { %551 = vst.msk [vmem:[#allocation2 + $0xd8] sm:$0x3] %vm541_vm2, %v2037_v30  ;;  %v766_v3 = vld [vmem:[#allocation2 + $0x3] ss:$2 sm:$0xff]  ;;  %v305_v33 = vld [vmem:[%s2143_s23 + $0xd8] sm:$0xff] }
  0x22   : > { %552 = vst.msk [vmem:[#allocation2 + $0xf0] sm:$0x3] %vm541_vm2, %v2037_v30  ;;  %v300_v14 = vld [vmem:[%s2143_s23 + $0xb0] sm:$0xff]  ;;  %v302_v23 = vld [vmem:[%s2143_s23 + $0xc0] sm:$0xff] }
  0x23   : > { %1727 = vmatmul.msk.bf16.vlgmr.msra.gmra.mxu0 %vm362_vm0, %v310_v6  ;;  %1741 = vmatmul.msk.bf16.vlgmr.msra.gmra.mxu2 %vm362_vm0, %v324_v27  ;;  %553 = vst.msk [vmem:[#allocation2 + $0x108] sm:$0x3] %vm541_vm2, %v2037_v30  ;;  %v304_v32 = vld [vmem:[%s2143_s23 + $0xd0] sm:$0xff] }
  0x24   : > { %742 = vmatpush.bf16.msrb.mxu2 %v1897_v39  ;;  %554 = vst.msk [vmem:[#allocation2 + $0x120] sm:$0x3] %vm541_vm2, %v2037_v30 }
  0x25   : > { %555 = vst.msk [vmem:[#allocation2 + $0x138] sm:$0x3] %vm541_vm2, %v2037_v30 }
  0x26   : > { %556 = vst.msk [vmem:[#allocation2 + $0x150] sm:$0x3] %vm541_vm2, %v2037_v30 }
  0x27   : > { %557 = vst.msk [vmem:[#allocation2 + $0x168] sm:$0x3] %vm541_vm2, %v2037_v30 }
  0x28   : > { %743 = vmatpush.bf16.msrb.mxu2 %v1896_v45  ;;  %558 = vst.msk [vmem:[#allocation2 + $0x180] sm:$0x3] %vm541_vm2, %v2037_v30 }
  0x33   : > { %1728 = vmatmul.msk.bf16.gmra.mxu0 %vm362_vm0, %v311_v9  ;;  %1742 = vmatmul.msk.bf16.gmra.mxu2 %vm362_vm0, %v325_v34  ;;  %v323_v34 = vpack.c.bf16 %v305_v33, %v304_v32 }
  0x43   : > { %1729 = vmatmul.msk.bf16.gmra.mxu0 %vm362_vm0, %v312_v12 }
  0x53   : > { %1730 = vmatmul.msk.bf16.gmra.mxu0 %vm362_vm0, %v313_v15  ;;  %v301_v15 = vld [vmem:[%s2143_s23 + $0xb8] sm:$0xff] }
  0x54   : > { %v321_v16 = vpack.c.bf16 %v301_v15, %v300_v14 }
  0x63   : > { %1731 = vmatmul.msk.bf16.gmra.mxu0 %vm362_vm0, %v314_v18 }
  0x73   : > { %1732 = vmatmul.msk.bf16.gmra.mxu0 %vm362_vm0, %v315_v21 }
  0x83   : > { %1733 = vmatmul.msk.bf16.gmra.mxu0 %vm362_vm0, %v316_v24  ;;  %v303_v24 = vld [vmem:[%s2143_s23 + $0xc8] sm:$0xff] }
  0x84   : > { %v322_v25 = vpack.c.bf16 %v303_v24, %v302_v23 }
  0x93   : > { %1734 = vmatmul.msk.bf16.gmra.mxu0 %vm362_vm0, %v317_v31 }
  0xa0   : > { %v420_v42 = vpop.f32.mrf.mxu0 }
  0xa1   : > { %v421_v43 = vadd.f32 %v2187_v37, %v420_v42 }
  0xa3   : > { %v500_v47 = vmax.f32 %v421_v43, 0.0  ;;  %1735 = vmatmul.msk.bf16.gmra.mxu0 %vm362_vm0, %v318_v41 }
  0xa5   : > { %579 = vst.msk [vmem:[#allocation2 + $0x1a] sm:$0xff] %vm532_vm1, %v500_v47 }
  0xa8   : > { %v422_v48 = vpop.f32.mrf.mxu0 }
  0xa9   : > { %v423_v49 = vadd.f32 %v2187_v37, %v422_v48 }
  0xab   : > { %v501_v50 = vmax.f32 %v423_v49, 0.0 }
  0xad   : > { %580 = vst.msk [vmem:[#allocation2 + $0x22] sm:$0xff] %vm532_vm1, %v501_v50 }
  0xb0   : > { %v425_v54 = vpop.f32.mrf.mxu0 }
  0xb1   : > { %v426_v55 = vadd.f32 %v2187_v37, %v425_v54 }
  0xb3   : > { %v502_v56 = vmax.f32 %v426_v55, 0.0  ;;  %1736 = vmatmul.msk.bf16.gmra.mxu0 %vm362_vm0, %v319_v53 }
  0xb5   : > { %581 = vst.msk [vmem:[#allocation2 + $0x32] sm:$0xff] %vm532_vm1, %v502_v56 }
  0xb8   : > { %v427_v57 = vpop.f32.mrf.mxu0 }
  0xb9   : > { %v428_v58 = vadd.f32 %v2187_v37, %v427_v57  ;;  %v490_v57 = vpop.f32.mrf.mxu2 }
  0xbb   : > { %v503_v59 = vmax.f32 %v428_v58, 0.0  ;;  %v491_v58 = vadd.f32 %v2187_v37, %v490_v57 }
  0xbd   : > { %582 = vst.msk [vmem:[#allocation2 + $0x3a] sm:$0xff] %vm532_vm1, %v503_v59  ;;  %v528_v59 = vmax.f32 %v491_v58, 0.0 }
  0xbf   : > { %607 = vst.msk [vmem:[#allocation2 + $0x16a] sm:$0xff] %vm532_vm1, %v528_v59 }
  0xc0   : > { %v430_v63 = vpop.f32.mrf.mxu0 }
  0xc1   : > { %v431_v0 = vadd.f32 %v2187_v37, %v430_v63  ;;  %v492_v63 = vpop.f32.mrf.mxu2 }
  0xc3   : > { %v504_v4 = vmax.f32 %v431_v0, 0.0  ;;  %1737 = vmatmul.msk.bf16.gmra.mxu0 %vm362_vm0, %v320_v62  ;;  %v493_v0 = vadd.f32 %v2187_v37, %v492_v63  ;;  %v1902_v63 = vld [vmem:[%s2561_s3 + $0x30] sm:$0xff] }
  0xc4   : > { %v638_v5 = vld [vmem:[#allocation2 + $0x32] ss:$2 sm:$0xff]  ;;  %v614_v6 = vld [vmem:[#allocation2 + $0x31] ss:$2 sm:$0xff] }
  0xc5   : > { %v768_v7 = vld [vmem:[#allocation2 + $0x33] ss:$2 sm:$0xff]  ;;  %583 = vst.msk [vmem:[#allocation2 + $0x4a] sm:$0xff] %vm532_vm1, %v504_v4  ;;  %v651_v8 = vpack.c.bf16 %v638_v5, %v636_v1  ;;  %v627_v9 = vpack.c.bf16 %v614_v6, %v612_v2  ;;  %v529_v1 = vmax.f32 %v493_v0, 0.0 }
  0xc6   : > { %v781_v10 = vpack.c.bf16 %v768_v7, %v766_v3  ;;  %v1904_v0 = vld [vmem:[%s2561_s3 + $0x40] sm:$0xff] }
  0xc7   : > { %1751 = vmatmul.msk.bf16.vlgmr.msra.gmra.mxu1 %vm532_vm1, %v651_v8  ;;  %1763 = vmatmul.msk.bf16.vlgmr.msrb.gmra.mxu2 %vm532_vm1, %v627_v9  ;;  %608 = vst.msk [vmem:[#allocation2 + $0x172] sm:$0xff] %vm532_vm1, %v529_v1 }
  0xc8   : > { %1775 = vmatmul.msk.bf16.vlgmr.msra.gmra.mxu3 %vm532_vm1, %v781_v10  ;;  %v432_v11 = vpop.f32.mrf.mxu0 }
  0xc9   : > { %v433_v12 = vadd.f32 %v2187_v37, %v432_v11  ;;  %v495_v5 = vpop.f32.mrf.mxu2 }
  0xca   : > { %v496_v6 = vadd.f32 %v2187_v37, %v495_v5 }
  0xcb   : > { %v505_v13 = vmax.f32 %v433_v12, 0.0 }
  0xcc   : > { %v530_v7 = vmax.f32 %v496_v6, 0.0 }
  0xcd   : > { %584 = vst.msk [vmem:[#allocation2 + $0x52] sm:$0xff] %vm532_vm1, %v505_v13 }
  0xce   : > { %609 = vst.msk [vmem:[#allocation2 + $0x182] sm:$0xff] %vm532_vm1, %v530_v7 }
  0xd0   : > { %v435_v17 = vpop.f32.mrf.mxu0 }
  0xd1   : > { %v436_v18 = vadd.f32 %v2187_v37, %v435_v17  ;;  %v497_v11 = vpop.f32.mrf.mxu2 }
  0xd2   : > { %v498_v12 = vadd.f32 %v2187_v37, %v497_v11 }
  0xd3   : > { %v506_v19 = vmax.f32 %v436_v18, 0.0  ;;  %1738 = vmatmul.msk.bf16.gmra.mxu0 %vm362_vm0, %v321_v16 }
  0xd4   : > { %v531_v13 = vmax.f32 %v498_v12, 0.0 }
  0xd5   : > { %585 = vst.msk [vmem:[#allocation2 + $0x62] sm:$0xff] %vm532_vm1, %v506_v19 }
  0xd6   : > { %610 = vst.msk [vmem:[#allocation2 + $0x18a] sm:$0xff] %vm532_vm1, %v531_v13 }
  0xd8   : > { %v437_v20 = vpop.f32.mrf.mxu0 }
  0xd9   : > { %v438_v21 = vadd.f32 %v2187_v37, %v437_v20  ;;  %v1907_v20 = vld [vmem:[%s2561_s3 + $0x58] sm:$0xff] }
  0xda   : > { %1074 = vmatpush.bf16.msrb.mxu3 %v1907_v20 }
  0xdb   : > { %v507_v22 = vmax.f32 %v438_v21, 0.0 }
  0xdd   : > { %586 = vst.msk [vmem:[#allocation2 + $0x6a] sm:$0xff] %vm532_vm1, %v507_v22 }
  0xe0   : > { %v440_v26 = vpop.f32.mrf.mxu0 }
  0xe1   : > { %v441_v27 = vadd.f32 %v2187_v37, %v440_v26 }
  0xe3   : > { %v508_v28 = vmax.f32 %v441_v27, 0.0  ;;  %1739 = vmatmul.msk.bf16.gmra.mxu0 %vm362_vm0, %v322_v25 }
  0xe4   : > { %v640_v44 = vld [vmem:[#allocation2 + $0x62] ss:$2 sm:$0xff]  ;;  %v616_v46 = vld [vmem:[#allocation2 + $0x61] ss:$2 sm:$0xff] }
  0xe5   : > { %587 = vst.msk [vmem:[#allocation2 + $0x7a] sm:$0xff] %vm532_vm1, %v508_v28  ;;  %v770_v47 = vld [vmem:[#allocation2 + $0x63] ss:$2 sm:$0xff] }
  0xe8   : > { %v442_v29 = vpop.f32.mrf.mxu0 }
  0xe9   : > { %v443_v30 = vadd.f32 %v2187_v37, %v442_v29 }
  0xeb   : > { %v509_v31 = vmax.f32 %v443_v30, 0.0 }
  0xed   : > { %588 = vst.msk [vmem:[#allocation2 + $0x82] sm:$0xff] %vm532_vm1, %v509_v31 }
  0xf0   : > { %v445_v35 = vpop.f32.mrf.mxu0 }
  0xf1   : > { %v446_v36 = vadd.f32 %v2187_v37, %v445_v35 }
  0xf3   : > { %v510_v38 = vmax.f32 %v446_v36, 0.0  ;;  %1740 = vmatmul.msk.bf16.gmra.mxu0 %vm362_vm0, %v323_v34 }
  0xf5   : > { %589 = vst.msk [vmem:[#allocation2 + $0x92] sm:$0xff] %vm532_vm1, %v510_v38 }
  0xf8   : > { %v447_v39 = vpop.f32.mrf.mxu0 }
  0xf9   : > { %v448_v40 = vadd.f32 %v2187_v37, %v447_v39 }
  0xfb   : > { %v511_v41 = vmax.f32 %v448_v40, 0.0 }
  0xfd   : > { %590 = vst.msk [vmem:[#allocation2 + $0x9a] sm:$0xff] %vm532_vm1, %v511_v41 }
 0x100   : > { %v450_v42 = vpop.f32.mrf.mxu0 }
 0x101   : > { %v451_v43 = vadd.f32 %v2187_v37, %v450_v42 }
 0x103   : > { %v512_v45 = vmax.f32 %v451_v43, 0.0 }
 0x104   : > { %v642_v48 = vld [vmem:[#allocation2 + $0x92] ss:$2 sm:$0xff]  ;;  %v618_v49 = vld [vmem:[#allocation2 + $0x91] ss:$2 sm:$0xff] }
 0x105   : > { %v772_v50 = vld [vmem:[#allocation2 + $0x93] ss:$2 sm:$0xff]  ;;  %591 = vst.msk [vmem:[#allocation2 + $0xaa] sm:$0xff] %vm532_vm1, %v512_v45  ;;  %v652_v51 = vpack.c.bf16 %v642_v48, %v640_v44  ;;  %v628_v52 = vpack.c.bf16 %v618_v49, %v616_v46  ;;  %v1905_v48 = vld [vmem:[%s2561_s3 + $0x48] sm:$0xff] }
 0x106   : > { %v782_v53 = vpack.c.bf16 %v772_v50, %v770_v47  ;;  %v1906_v49 = vld [vmem:[%s2561_s3 + $0x50] sm:$0xff]  ;;  %989 = vmatpush.bf16.msra.mxu2 %v1905_v48 }
 0x107   : > { %1752 = vmatmul.msk.bf16.gmra.mxu1 %vm532_vm1, %v652_v51  ;;  %1764 = vmatmul.msk.bf16.gmra.mxu2 %vm532_vm1, %v628_v52 }
 0x108   : > { %1776 = vmatmul.msk.bf16.gmra.mxu3 %vm532_vm1, %v782_v53  ;;  %v452_v54 = vpop.f32.mrf.mxu0  ;;  %v1903_v53 = vld [vmem:[%s2561_s3 + $0x38] sm:$0xff] }
 0x109   : > { %v453_v55 = vadd.f32 %v2187_v37, %v452_v54  ;;  %1075 = vmatpush.bf16.msrb.mxu3 %v1906_v49  ;;  %904 = vmatpush.bf16.msrb.mxu1 %v1903_v53  ;;  %v1913_v53 = vld [vmem:[%s2561_s3 + $0x88] sm:$0xff] }
 0x10a   : > { %990 = vmatpush.bf16.msra.mxu2 %v1904_v0 }
 0x10b   : > { %v513_v56 = vmax.f32 %v453_v55, 0.0 }
 0x10d   : > { %592 = vst.msk [vmem:[#allocation2 + $0xb2] sm:$0xff] %vm532_vm1, %v513_v56  ;;  %905 = vmatpush.bf16.msrb.mxu1 %v1902_v63 }
 0x110   : > { %v455_v60 = vpop.f32.mrf.mxu0 }
 0x111   : > { %v456_v61 = vadd.f32 %v2187_v37, %v455_v60 }
 0x113   : > { %v514_v62 = vmax.f32 %v456_v61, 0.0 }
 0x115   : > { %593 = vst.msk [vmem:[#allocation2 + $0xc2] sm:$0xff] %vm532_vm1, %v514_v62 }
 0x118   : > { %v457_v2 = vpop.f32.mrf.mxu0 }
 0x119   : > { %v458_v3 = vadd.f32 %v2187_v37, %v457_v2  ;;  %v1909_v2 = vld [vmem:[%s2561_s3 + $0x68] sm:$0xff] }
 0x11a   : > { %1925 = vmatpush.bf16.msra.mxu3 %v1909_v2  ;;  %1160 = vmatpush.bf16.msra.mxu1 %v1909_v2 }
 0x11b   : > { %v515_v4 = vmax.f32 %v458_v3, 0.0 }
 0x11d   : > { %594 = vst.msk [vmem:[#allocation2 + $0xca] sm:$0xff] %vm532_vm1, %v515_v4 }
 0x120   : > { %v460_v8 = vpop.f32.mrf.mxu0 }
 0x121   : > { %v461_v9 = vadd.f32 %v2187_v37, %v460_v8 }
 0x123   : > { %v516_v10 = vmax.f32 %v461_v9, 0.0 }
 0x124   : > { %v644_v26 = vld [vmem:[#allocation2 + $0xc2] ss:$2 sm:$0xff]  ;;  %v620_v28 = vld [vmem:[#allocation2 + $0xc1] ss:$2 sm:$0xff] }
 0x125   : > { %595 = vst.msk [vmem:[#allocation2 + $0xda] sm:$0xff] %vm532_vm1, %v516_v10  ;;  %v774_v29 = vld [vmem:[#allocation2 + $0xc3] ss:$2 sm:$0xff] }
 0x128   : > { %v462_v14 = vpop.f32.mrf.mxu0 }
 0x129   : > { %v463_v15 = vadd.f32 %v2187_v37, %v462_v14 }
 0x12b   : > { %v517_v16 = vmax.f32 %v463_v15, 0.0 }
 0x12d   : > { %596 = vst.msk [vmem:[#allocation2 + $0xe2] sm:$0xff] %vm532_vm1, %v517_v16  ;;  %v1911_v16 = vld [vmem:[%s2561_s3 + $0x78] sm:$0xff] }
 0x12e   : > { %1245 = vmatpush.bf16.msrb.mxu2 %v1911_v16 }
 0x130   : > { %v465_v17 = vpop.f32.mrf.mxu0 }
 0x131   : > { %v466_v18 = vadd.f32 %v2187_v37, %v465_v17 }
 0x133   : > { %v518_v19 = vmax.f32 %v466_v18, 0.0 }
 0x134   : > { %v944_v48 = vld [vmem:[#allocation2 + $0xda] ss:$2 sm:$0xff] }
 0x135   : > { %597 = vst.msk [vmem:[#allocation2 + $0xf2] sm:$0xff] %vm532_vm1, %v518_v19 }
 0x138   : > { %v467_v21 = vpop.f32.mrf.mxu0 }
 0x139   : > { %v468_v22 = vadd.f32 %v2187_v37, %v467_v21 }
 0x13b   : > { %v519_v23 = vmax.f32 %v468_v22, 0.0  ;;  %v853_v22 = vld [vmem:[#allocation2 + $0x49] ss:$2 sm:$0xff] }
 0x13d   : > { %598 = vst.msk [vmem:[#allocation2 + $0xfa] sm:$0xff] %vm532_vm1, %v519_v23  ;;  %v938_v23 = vld [vmem:[#allocation2 + $0x4a] ss:$2 sm:$0xff] }
 0x140   : > { %v470_v24 = vpop.f32.mrf.mxu0 }
 0x141   : > { %v471_v25 = vadd.f32 %v2187_v37, %v470_v24  ;;  %v1023_v24 = vld [vmem:[#allocation2 + $0x4b] ss:$2 sm:$0xff] }
 0x143   : > { %v520_v27 = vmax.f32 %v471_v25, 0.0  ;;  %v851_v25 = vld [vmem:[#allocation2 + $0x19] ss:$2 sm:$0xff] }
 0x144   : > { %v646_v30 = vld [vmem:[#allocation2 + $0xf2] ss:$2 sm:$0xff]  ;;  %v622_v31 = vld [vmem:[#allocation2 + $0xf1] ss:$2 sm:$0xff]  ;;  %v692_v39 = vpop.f32.mrf.mxu1 }
 0x145   : > { %v776_v32 = vld [vmem:[#allocation2 + $0xf3] ss:$2 sm:$0xff]  ;;  %599 = vst.msk [vmem:[#allocation2 + $0x10a] sm:$0xff] %vm532_vm1, %v520_v27  ;;  %v653_v33 = vpack.c.bf16 %v646_v30, %v644_v26  ;;  %v629_v34 = vpack.c.bf16 %v622_v31, %v620_v28  ;;  %v936_v26 = vld [vmem:[#allocation2 + $0x1a] ss:$2 sm:$0xff]  ;;  %v866_v27 = vpack.c.bf16 %v853_v22, %v851_v25 }
 0x146   : > { %v783_v35 = vpack.c.bf16 %v776_v32, %v774_v29  ;;  %v951_v28 = vpack.c.bf16 %v938_v23, %v936_v26  ;;  %v1021_v29 = vld [vmem:[#allocation2 + $0x1b] ss:$2 sm:$0xff]  ;;  %v1198_v26 = vld [vmem:[#allocation2 + $0xc2] ss:$2 sm:$0xff] }
 0x147   : > { %1753 = vmatmul.msk.bf16.gmra.mxu1 %vm532_vm1, %v653_v33  ;;  %1765 = vmatmul.msk.bf16.gmra.mxu2 %vm532_vm1, %v629_v34  ;;  %v1036_v30 = vpack.c.bf16 %v1023_v24, %v1021_v29  ;;  %v1908_v31 = vld [vmem:[%s2561_s3 + $0x60] sm:$0xff]  ;;  %v857_v32 = vld [vmem:[#allocation2 + $0xa9] ss:$2 sm:$0xff]  ;;  %v942_v33 = vld [vmem:[#allocation2 + $0xaa] ss:$2 sm:$0xff] }
 0x148   : > { %1777 = vmatmul.msk.bf16.gmra.mxu3 %vm532_vm1, %v783_v35  ;;  %v472_v36 = vpop.f32.mrf.mxu0  ;;  %1161 = vmatpush.bf16.msra.mxu1 %v1908_v31  ;;  %v1027_v34 = vld [vmem:[#allocation2 + $0xab] ss:$2 sm:$0xff] }
 0x149   : > { %v473_v38 = vadd.f32 %v2187_v37, %v472_v36  ;;  %1926 = vmatpush.bf16.msra.mxu3 %v1908_v31  ;;  %v855_v35 = vld [vmem:[#allocation2 + $0x79] ss:$2 sm:$0xff]  ;;  %v940_v36 = vld [vmem:[#allocation2 + $0x7a] ss:$2 sm:$0xff] }
 0x14a   : > { %v745_v40 = vpop.f32.mrf.mxu2  ;;  %v1115_v22 = vld [vmem:[#allocation2 + $0xf1] ss:$2 sm:$0xff]  ;;  %v1113_v25 = vld [vmem:[#allocation2 + $0xc1] ss:$2 sm:$0xff] }
 0x14b   : > { %v521_v41 = vmax.f32 %v473_v38, 0.0  ;;  %v746_v42 = vadd.f32 %v745_v40, %v692_v39  ;;  %v822_v43 = vpop.f32.mrf.mxu3  ;;  %v867_v38 = vpack.c.bf16 %v857_v32, %v855_v35  ;;  %v952_v39 = vpack.c.bf16 %v942_v33, %v940_v36  ;;  %v1025_v40 = vld [vmem:[#allocation2 + $0x7b] ss:$2 sm:$0xff]  ;;  %v1200_v36 = vld [vmem:[#allocation2 + $0xf2] ss:$2 sm:$0xff] }
 0x14c   : > { %v2354_v5 = vpop.f32.mrf.mxu1  ;;  %v1111_v29 = vld [vmem:[#allocation2 + $0x91] ss:$2 sm:$0xff] }
 0x14d   : > { %600 = vst.msk [vmem:[#allocation2 + $0x112] sm:$0xff] %vm532_vm1, %v521_v41  ;;  %v2322_v44 = vadd.f32 %v822_v43, %v746_v42  ;;  %v1037_v41 = vpack.c.bf16 %v1027_v34, %v1025_v40  ;;  %v1123_v31 = vpack.c.bf16 %v1113_v25, %v1111_v29  ;;  %v1279_v35 = vld [vmem:[#allocation2 + $0x63] ss:$2 sm:$0xff] }
 0x150   : > { %v475_v45 = vpop.f32.mrf.mxu0 }
 0x151   : > { %v476_v46 = vadd.f32 %v2187_v37, %v475_v45 }
 0x152   : > { %v2356_v6 = vpop.f32.mrf.mxu2 }
 0x153   : > { %v522_v47 = vmax.f32 %v476_v46, 0.0  ;;  %v2358_v10 = vpop.f32.mrf.mxu3  ;;  %v1910_v46 = vld [vmem:[%s2561_s3 + $0x70] sm:$0xff] }
 0x154   : > { %v861_v42 = vld [vmem:[#allocation2 + $0x109] ss:$2 sm:$0xff]  ;;  %v946_v43 = vld [vmem:[#allocation2 + $0x10a] ss:$2 sm:$0xff]  ;;  %1246 = vmatpush.bf16.msrb.mxu2 %v1910_v46 }
 0x155   : > { %601 = vst.msk [vmem:[#allocation2 + $0x122] sm:$0xff] %vm532_vm1, %v522_v47  ;;  %v1031_v45 = vld [vmem:[#allocation2 + $0x10b] ss:$2 sm:$0xff] }
 0x156   : > { %v859_v47 = vld [vmem:[#allocation2 + $0xd9] ss:$2 sm:$0xff] }
 0x157   : > { %v868_v49 = vpack.c.bf16 %v861_v42, %v859_v47  ;;  %v1851_v42 = vld [vmem:[%s2143_s23 + $0x20] ss:$2 sm:$0xff] }
 0x158   : > { %v477_v50 = vpop.f32.mrf.mxu0 }
 0x159   : > { %v478_v51 = vadd.f32 %v2187_v37, %v477_v50  ;;  %v953_v50 = vpack.c.bf16 %v946_v43, %v944_v48 }
 0x15b   : > { %v523_v52 = vmax.f32 %v478_v51, 0.0  ;;  %v1029_v51 = vld [vmem:[#allocation2 + $0xdb] ss:$2 sm:$0xff] }
 0x15d   : > { %602 = vst.msk [vmem:[#allocation2 + $0x12a] sm:$0xff] %vm532_vm1, %v523_v52  ;;  %v1038_v52 = vpack.c.bf16 %v1031_v45, %v1029_v51  ;;  %v1405_v45 = vpack.c.bf16 %v1851_v42, %v1851_v42  ;;  %v1283_v51 = vld [vmem:[#allocation2 + $0xc3] ss:$2 sm:$0xff] }
 0x15f   : > { %v1441_v47 = vunpack.c.l.b16 %v1405_v45  ;;  %v1857_v45 = vld [vmem:[%s2143_s23 + $0xe0] ss:$2 sm:$0xff] }
 0x160   : > { %v480_v54 = vpop.f32.mrf.mxu0 }
 0x161   : > { %v481_v55 = vadd.f32 %v2187_v37, %v480_v54 }
 0x163   : > { %v524_v56 = vmax.f32 %v481_v55, 0.0  ;;  %v865_v55 = vld [vmem:[#allocation2 + $0x169] ss:$2 sm:$0xff] }
 0x164   : > { %v648_v7 = vld [vmem:[#allocation2 + $0x122] ss:$2 sm:$0xff]  ;;  %v624_v8 = vld [vmem:[#allocation2 + $0x121] ss:$2 sm:$0xff] }
 0x165   : > { %603 = vst.msk [vmem:[#allocation2 + $0x13a] sm:$0xff] %vm532_vm1, %v524_v56  ;;  %v778_v9 = vld [vmem:[#allocation2 + $0x123] ss:$2 sm:$0xff]  ;;  %v1202_v34 = vld [vmem:[#allocation2 + $0x122] ss:$2 sm:$0xff] }
 0x168   : > { %v482_v57 = vpop.f32.mrf.mxu0 }
 0x169   : > { %v483_v58 = vadd.f32 %v2187_v37, %v482_v57 }
 0x16b   : > { %v525_v59 = vmax.f32 %v483_v58, 0.0 }
 0x16d   : > { %604 = vst.msk [vmem:[#allocation2 + $0x142] sm:$0xff] %vm532_vm1, %v525_v59  ;;  %v950_v59 = vld [vmem:[#allocation2 + $0x16a] ss:$2 sm:$0xff] }
 0x170   : > { %v485_v60 = vpop.f32.mrf.mxu0 }
 0x171   : > { %v486_v61 = vadd.f32 %v2187_v37, %v485_v60 }
 0x173   : > { %v526_v62 = vmax.f32 %v486_v61, 0.0 }
 0x174   : > { %v863_v57 = vld [vmem:[#allocation2 + $0x139] ss:$2 sm:$0xff]  ;;  %v948_v58 = vld [vmem:[#allocation2 + $0x13a] ss:$2 sm:$0xff] }
 0x175   : > { %605 = vst.msk [vmem:[#allocation2 + $0x152] sm:$0xff] %vm532_vm1, %v526_v62  ;;  %v1033_v61 = vld [vmem:[#allocation2 + $0x13b] ss:$2 sm:$0xff]  ;;  %v1035_v62 = vld [vmem:[#allocation2 + $0x16b] ss:$2 sm:$0xff]  ;;  %v869_v63 = vpack.c.bf16 %v865_v55, %v863_v57  ;;  %v954_v0 = vpack.c.bf16 %v950_v59, %v948_v58 }
 0x176   : > { %v1281_v55 = vld [vmem:[#allocation2 + $0x93] ss:$2 sm:$0xff]  ;;  %v1852_v58 = vld [vmem:[%s2143_s23 + $0x40] ss:$2 sm:$0xff] }
 0x177   : > { %v1293_v57 = vpack.c.bf16 %v1283_v51, %v1281_v55  ;;  %v1853_v59 = vld [vmem:[%s2143_s23 + $0x60] ss:$2 sm:$0xff] }
 0x178   : > { %v487_v1 = vpop.f32.mrf.mxu0 }
 0x179   : > { %v488_v3 = vadd.f32 %v2187_v37, %v487_v1  ;;  %v1039_v1 = vpack.c.bf16 %v1035_v62, %v1033_v61  ;;  %v1406_v61 = vpack.c.bf16 %v1852_v58, %v1852_v58  ;;  %v1407_v62 = vpack.c.bf16 %v1853_v59, %v1853_v59 }
 0x17b   : > { %v527_v4 = vmax.f32 %v488_v3, 0.0  ;;  %v1912_v3 = vld [vmem:[%s2561_s3 + $0x80] sm:$0xff] }
 0x17d   : > { %606 = vst.msk [vmem:[#allocation2 + $0x15a] sm:$0xff] %vm532_vm1, %v527_v4 }
 0x184   : > { %v650_v11 = vld [vmem:[#allocation2 + $0x152] ss:$2 sm:$0xff]  ;;  %v626_v12 = vld [vmem:[#allocation2 + $0x151] ss:$2 sm:$0xff]  ;;  %v697_v17 = vpop.f32.mrf.mxu1 }
 0x185   : > { %v780_v13 = vld [vmem:[#allocation2 + $0x153] ss:$2 sm:$0xff]  ;;  %v654_v14 = vpack.c.bf16 %v650_v11, %v648_v7  ;;  %v630_v15 = vpack.c.bf16 %v626_v12, %v624_v8 }
 0x186   : > { %v784_v37 = vpack.c.bf16 %v780_v13, %v778_v9  ;;  %v1109_v13 = vld [vmem:[#allocation2 + $0x61] ss:$2 sm:$0xff] }
 0x187   : > { %1754 = vmatmul.msk.bf16.gmra.mxu1 %vm532_vm1, %v654_v14  ;;  %1766 = vmatmul.msk.bf16.gmra.mxu2 %vm532_vm1, %v630_v15  ;;  %v1194_v14 = vld [vmem:[#allocation2 + $0x62] ss:$2 sm:$0xff] }
 0x188   : > { %1778 = vmatmul.msk.bf16.gmra.mxu3 %vm532_vm1, %v784_v37  ;;  %v1117_v37 = vld [vmem:[#allocation2 + $0x121] ss:$2 sm:$0xff] }
 0x189   : > { %v1124_v24 = vpack.c.bf16 %v1117_v37, %v1115_v22  ;;  %v1855_v22 = vld [vmem:[%s2143_s23 + $0xa0] ss:$2 sm:$0xff] }
 0x18a   : > { %v750_v18 = vpop.f32.mrf.mxu2 }
 0x18b   : > { %v751_v19 = vadd.f32 %v750_v18, %v697_v17  ;;  %v827_v20 = vpop.f32.mrf.mxu3  ;;  %v1107_v17 = vld [vmem:[#allocation2 + $0x31] ss:$2 sm:$0xff]  ;;  %v1192_v18 = vld [vmem:[#allocation2 + $0x32] ss:$2 sm:$0xff] }
 0x18c   : > { %v2386_v54 = vpop.f32.mrf.mxu1  ;;  %v1207_v23 = vpack.c.bf16 %v1194_v14, %v1192_v18  ;;  %v1287_v14 = vld [vmem:[#allocation2 + $0x123] ss:$2 sm:$0xff] }
 0x18d   : > { %v2366_v21 = vadd.f32 %v827_v20, %v751_v19  ;;  %v1122_v20 = vpack.c.bf16 %v1109_v13, %v1107_v17  ;;  %v1285_v17 = vld [vmem:[#allocation2 + $0xf3] ss:$2 sm:$0xff] }
 0x18e   : > { %v1294_v18 = vpack.c.bf16 %v1287_v14, %v1285_v17 }
 0x192   : > { %v2388_v56 = vpop.f32.mrf.mxu2 }
 0x193   : > { %v2390_v60 = vpop.f32.mrf.mxu3 }
 0x197   : > { %1787 = vmatmul.msk.bf16.vlgmr.msrb.gmra.mxu1 %vm532_vm1, %v866_v27  ;;  %1799 = vmatmul.msk.bf16.vlgmr.msra.gmra.mxu2 %vm532_vm1, %v951_v28  ;;  %v1119_v27 = vld [vmem:[#allocation2 + $0x151] ss:$2 sm:$0xff]  ;;  %v1121_v28 = vld [vmem:[#allocation2 + $0x181] ss:$2 sm:$0xff] }
 0x198   : > { %1811 = vmatmul.msk.bf16.vlgmr.msrb.gmra.mxu3 %vm532_vm1, %v1036_v30  ;;  %v1196_v30 = vld [vmem:[#allocation2 + $0x92] ss:$2 sm:$0xff]  ;;  %v1125_v33 = vpack.c.bf16 %v1121_v28, %v1119_v27  ;;  %v748_v28 = vadd.f32 %v2356_v6, %v2354_v5 }
 0x199   : > { %1330 = vmatpush.bf16.msrb.mxu3 %v1913_v53  ;;  %v1208_v32 = vpack.c.bf16 %v1198_v26, %v1196_v30 }
 0x19d   : > { %1331 = vmatpush.bf16.msrb.mxu3 %v1912_v3 }
 0x1a7   : > { %1788 = vmatmul.msk.bf16.gmra.mxu1 %vm532_vm1, %v867_v38  ;;  %1800 = vmatmul.msk.bf16.gmra.mxu2 %vm532_vm1, %v952_v39  ;;  %v1209_v38 = vpack.c.bf16 %v1202_v34, %v1200_v36  ;;  %v1277_v39 = vld [vmem:[#allocation2 + $0x33] ss:$2 sm:$0xff] }
 0x1a8   : > { %1812 = vmatmul.msk.bf16.gmra.mxu3 %vm532_vm1, %v1037_v41  ;;  %v1292_v40 = vpack.c.bf16 %v1279_v35, %v1277_v39  ;;  %v1389_v41 = vld [vmem:[%s2143_s23] ss:$2 sm:$0xff]  ;;  %v1289_v39 = vld [vmem:[#allocation2 + $0x153] ss:$2 sm:$0xff] }
 0x1a9   : > { %v1404_v43 = vpack.c.bf16 %v1389_v41, %v1389_v41 }
 0x1ab   : > { %v1440_v46 = vunpack.c.l.b16 %v1404_v43  ;;  %v1856_v43 = vld [vmem:[%s2143_s23 + $0xc0] ss:$2 sm:$0xff] }
 0x1ad   : > { %v1448_v48 = vpack.c.b16 %v1441_v47, %v1440_v46  ;;  %v1410_v46 = vpack.c.bf16 %v1856_v43, %v1856_v43  ;;  %v1411_v47 = vpack.c.bf16 %v1857_v45, %v1857_v45  ;;  %v2482_v45 = vld [vmem:[%s2562_s4] ss:$0 sm:$0xff] }
 0x1af   : > { %1452 = vrot.lane.b32.xlu0 %v1448_v48, %s2038_s8 }
 0x1b7   : > { %1789 = vmatmul.msk.bf16.gmra.mxu1 %vm532_vm1, %v868_v49  ;;  %1801 = vmatmul.msk.bf16.gmra.mxu2 %vm532_vm1, %v953_v50  ;;  %v1204_v49 = vld [vmem:[#allocation2 + $0x152] ss:$2 sm:$0xff]  ;;  %v1206_v50 = vld [vmem:[#allocation2 + $0x182] ss:$2 sm:$0xff] }
 0x1b8   : > { %1813 = vmatmul.msk.bf16.gmra.mxu3 %vm532_vm1, %v1038_v52  ;;  %v1210_v53 = vpack.c.bf16 %v1206_v50, %v1204_v49  ;;  %v1447_v49 = vunpack.c.l.b16 %v1411_v47  ;;  %v753_v50 = vadd.f32 %v2388_v56, %v2386_v54 }
 0x1c4   : > { %v702_v2 = vpop.f32.mrf.mxu1 }
 0x1c7   : > { %1790 = vmatmul.msk.bf16.gmra.mxu1 %vm532_vm1, %v869_v63  ;;  %1802 = vmatmul.msk.bf16.gmra.mxu2 %vm532_vm1, %v954_v0  ;;  %v1442_v0 = vunpack.c.l.b16 %v1406_v61 }
 0x1c8   : > { %1814 = vmatmul.msk.bf16.gmra.mxu3 %vm532_vm1, %v1039_v1  ;;  %v1443_v1 = vunpack.c.l.b16 %v1407_v62 }
 0x1ca   : > { %v755_v4 = vpop.f32.mrf.mxu2 }
 0x1cb   : > { %v756_v7 = vadd.f32 %v755_v4, %v702_v2  ;;  %v832_v8 = vpop.f32.mrf.mxu3 }
 0x1cc   : > { %v704_v11 = vpop.f32.mrf.mxu1 }
 0x1cd   : > { %v2398_v9 = vadd.f32 %v832_v8, %v756_v7  ;;  %v1449_v7 = vpack.c.b16 %v1443_v1, %v1442_v0 }
 0x1cf   : > { %1454 = vrot.lane.b32.xlu0 %v1449_v7, %s2038_s8 }
 0x1d2   : > { %v757_v12 = vpop.f32.mrf.mxu2 }
 0x1d3   : > { %v758_v15 = vadd.f32 %v757_v12, %v704_v11  ;;  %v834_v16 = vpop.f32.mrf.mxu3 }
 0x1d5   : > { %v2400_v19 = vadd.f32 %v834_v16, %v758_v15 }
 0x1d7   : > { %1823 = vmatmul.msk.bf16.vlgmr.msra.gmra.mxu1 %vm532_vm1, %v1122_v20  ;;  %1835 = vmatmul.msk.bf16.vlgmr.msrb.gmra.mxu2 %vm532_vm1, %v1207_v23  ;;  %v1854_v20 = vld [vmem:[%s2143_s23 + $0x80] ss:$2 sm:$0xff]  ;;  %s269_s23 = sand.u32 1, %s2027_s25  }
 0x1d8   : > { %1825 = vmatmul.msk.bf16.vlgmr.msra.gmra.mxu3 %vm532_vm1, %v1124_v24  ;;  %v1408_v23 = vpack.c.bf16 %v1854_v20, %v1854_v20  ;;  %v1409_v24 = vpack.c.bf16 %v1855_v22, %v1855_v22  ;;  %s1708_s14 = sshll.u32 %s269_s23, 6  ;;  %s1579_s22 = scalar_lea.sflag [#allocation4], %s269_s23 }
 0x1d9   : > { %s2514_s15 = scalar_lea.vmem [#allocation3], %s1708_s14 }
 0x1da   : > { %v1444_v26 = vunpack.c.l.b16 %v1408_v23  ;;  %v1445_v27 = vunpack.c.l.b16 %v1409_v24  ;;  %s1591_s20 = sshll.u32 %s2514_s15, 4  ;;  %s1592_s20 = int_to_ptr.vmem [resolvable:$true] %s1591_s20 }
 0x1e7   : > { %1824 = vmatmul.msk.bf16.gmra.mxu1 %vm532_vm1, %v1123_v31  ;;  %1836 = vmatmul.msk.bf16.gmra.mxu2 %vm532_vm1, %v1208_v32 }
 0x1e8   : > { %1826 = vmatmul.msk.bf16.gmra.mxu3 %vm532_vm1, %v1125_v33  ;;  %v843_v33 = vadd.f32 %v2358_v10, %v748_v28  ;;  %v1446_v10 = vunpack.c.l.b16 %v1410_v46 }
 0x1ea   : > { %v1451_v55 = vpack.c.b16 %v1447_v49, %v1446_v10 }
 0x1f7   : > { %1837 = vmatmul.msk.bf16.gmra.mxu2 %vm532_vm1, %v1209_v38 }
 0x1f8   : > { %1847 = vmatmul.msk.bf16.vlgmr.msrb.gmra.mxu3 %vm532_vm1, %v1292_v40  ;;  %v1291_v40 = vld [vmem:[#allocation2 + $0x183] ss:$2 sm:$0xff] }
 0x1f9   : > { %v1295_v42 = vpack.c.bf16 %v1291_v40, %v1289_v39 }
 0x204   : > { %v707_v52 = vpop.f32.mrf.mxu1 }
 0x207   : > { %1838 = vmatmul.msk.bf16.gmra.mxu2 %vm532_vm1, %v1210_v53 }
 0x208   : > { %1848 = vmatmul.msk.bf16.gmra.mxu3 %vm532_vm1, %v1293_v57 }
 0x20a   : > { %v760_v63 = vpop.f32.mrf.mxu2 }
 0x20b   : > { %v761_v2 = vadd.f32 %v760_v63, %v707_v52  ;;  %v837_v3 = vpop.f32.mrf.mxu3 }
 0x20c   : > { %v709_v4 = vpop.f32.mrf.mxu1 }
 0x20d   : > { %v2417_v8 = vadd.f32 %v837_v3, %v761_v2 }
 0x212   : > { %v762_v11 = vpop.f32.mrf.mxu2 }
 0x213   : > { %v763_v12 = vadd.f32 %v762_v11, %v709_v4  ;;  %v839_v13 = vpop.f32.mrf.mxu3 }
 0x214   : > { %v907_v15 = vpop.f32.mrf.mxu1 }
 0x215   : > { %v2420_v37 = vadd.f32 %v839_v13, %v763_v12  ;;  %v927_v16 = vadd.f32 %v907_v15, %v2322_v44  ;;  %v1450_v44 = vpack.c.b16 %v1445_v27, %v1444_v26  ;;  %v1918_v26 = vld [vmem:[%s2563_s5 + $0x20] sm:$0xff] }
 0x217   : > { %1456 = vrot.lane.b32.xlu1 %v1450_v44, %s2038_s8  ;;  %v1915_v44 = vld [vmem:[%s2563_s5 + $0x8] sm:$0xff] }
 0x218   : > { %1849 = vmatmul.msk.bf16.gmra.mxu3 %vm532_vm1, %v1294_v18 }
 0x21a   : > { %v992_v25 = vpop.f32.mrf.mxu2 }
 0x21b   : > { %v1012_v29 = vadd.f32 %v992_v25, %v927_v16  ;;  %v1077_v30 = vpop.f32.mrf.mxu3 }
 0x21c   : > { %v909_v31 = vpop.f32.mrf.mxu1 }
 0x21d   : > { %v2428_v32 = vadd.f32 %v1077_v30, %v1012_v29  ;;  %v928_v34 = vadd.f32 %v909_v31, %v843_v33  ;;  %v1917_v29 = vld [vmem:[%s2563_s5 + $0x18] sm:$0xff] }
 0x21f   : > { %1458 = vrot.lane.b32.xlu1 %v1451_v55, %s2038_s8 }
 0x222   : > { %v994_v35 = vpop.f32.mrf.mxu2 }
 0x223   : > { %v1013_v36 = vadd.f32 %v994_v35, %v928_v34  ;;  %v1079_v38 = vpop.f32.mrf.mxu3  ;;  %v1914_v35 = vld [vmem:[%s2563_s5] sm:$0xff] }
 0x224   : > { %v912_v41 = vpop.f32.mrf.mxu1 }
 0x225   : > { %v2432_v5 = vadd.f32 %v1079_v38, %v1013_v36  ;;  %v929_v6 = vadd.f32 %v912_v41, %v2366_v21  ;;  %v845_v21 = vadd.f32 %v2390_v60, %v753_v50 }
 0x228   : > { %1850 = vmatmul.msk.bf16.gmra.mxu3 %vm532_vm1, %v1295_v42 }
 0x22a   : > { %v997_v48 = vpop.f32.mrf.mxu2 }
 0x22b   : > { %v1014_v51 = vadd.f32 %v997_v48, %v929_v6  ;;  %v1082_v52 = vpop.f32.mrf.mxu3 }
 0x22c   : > { %v914_v53 = vpop.f32.mrf.mxu1 }
 0x22d   : > { %v2440_v57 = vadd.f32 %v1082_v52, %v1014_v51  ;;  %v930_v58 = vadd.f32 %v914_v53, %v845_v21 }
 0x232   : > { %v999_v59 = vpop.f32.mrf.mxu2 }
 0x233   : > { %v1015_v61 = vadd.f32 %v999_v59, %v930_v58  ;;  %v1084_v62 = vpop.f32.mrf.mxu3 }
 0x234   : > { %v917_v63 = vpop.f32.mrf.mxu1 }
 0x235   : > { %v2444_v0 = vadd.f32 %v1084_v62, %v1015_v61  ;;  %v931_v1 = vadd.f32 %v917_v63, %v2398_v9  ;;  %v1919_v9 = vld [vmem:[%s2563_s5 + $0x28] sm:$0xff] }
 0x236   : > { %1535 = vmatpush.bf16.msrb.mxu1 %v1919_v9 }
 0x23a   : > { %v1002_v54 = vpop.f32.mrf.mxu2  ;;  %1536 = vmatpush.bf16.msrb.mxu1 %v1918_v26 }
 0x23b   : > { %v1016_v56 = vadd.f32 %v1002_v54, %v931_v1  ;;  %v1087_v2 = vpop.f32.mrf.mxu3 }
 0x23c   : > { %v919_v3 = vpop.f32.mrf.mxu1 }
 0x23d   : > { %v1101_v4 = vadd.f32 %v1087_v2, %v1016_v56  ;;  %v932_v7 = vadd.f32 %v919_v3, %v2400_v19  ;;  %v1453_v56 = vpop.permute.xlu0 %1452 }
 0x23e   : > { %1537 = vmatpush.bf16.msrb.mxu1 %v1917_v29 }
 0x242   : > { %v1004_v11 = vpop.f32.mrf.mxu2 }
 0x243   : > { %v1017_v12 = vadd.f32 %v1004_v11, %v932_v7  ;;  %v1089_v13 = vpop.f32.mrf.mxu3 }
 0x244   : > { %v922_v60 = vpop.f32.mrf.mxu1 }
 0x245   : > { %v2448_v14 = vadd.f32 %v1089_v13, %v1017_v12  ;;  %v933_v15 = vadd.f32 %v922_v60, %v2417_v8 }
 0x24a   : > { %v1007_v16 = vpop.f32.mrf.mxu2 }
 0x24b   : > { %v1018_v17 = vadd.f32 %v1007_v16, %v933_v15  ;;  %v1092_v18 = vpop.f32.mrf.mxu3 }
 0x24c   : > { %v924_v22 = vpop.f32.mrf.mxu1 }
 0x24d   : > { %v1103_v20 = vadd.f32 %v1092_v18, %v1018_v17  ;;  %v934_v19 = vadd.f32 %v924_v22, %v2420_v37  ;;  %v1916_v37 = vld [vmem:[%s2563_s5 + $0x10] sm:$0xff] }
 0x24e   : > { %1538 = vmatpush.bf16.msrb.mxu1 %v1916_v37 }
 0x252   : > { %v1009_v23 = vpop.f32.mrf.mxu2  ;;  %1539 = vmatpush.bf16.msrb.mxu1 %v1915_v44 }
 0x253   : > { %v1019_v24 = vadd.f32 %v1009_v23, %v934_v19  ;;  %v1094_v25 = vpop.f32.mrf.mxu3 }
 0x254   : > { %v1163_v36 = vpop.f32.mrf.mxu1 }
 0x255   : > { %v2458_v8 = vadd.f32 %v1094_v25, %v1019_v24  ;;  %v1183_v40 = vadd.f32 %v1163_v36, %v2428_v32  ;;  %v1455_v24 = vpop.permute.xlu0 %1454 }
 0x256   : > { %1540 = vmatpush.bf16.msrb.mxu1 %v1914_v35 }
 0x25a   : > { %v1248_v31 = vpop.f32.mrf.mxu2 }
 0x25b   : > { %v1173_v27 = vpop.f32.mrf.mxu3  ;;  %v1268_v6 = vadd.f32 %v1248_v31, %v1183_v40 }
 0x25c   : > { %v1187_v28 = vadd.f32 %v1173_v27, %v1101_v4  ;;  %v1165_v41 = vpop.f32.mrf.mxu1 }
 0x25d   : > { %v1184_v47 = vadd.f32 %v1165_v41, %v2432_v5 }
 0x262   : > { %v1250_v38 = vpop.f32.mrf.mxu2 }
 0x263   : > { %v2463_v30 = vpop.f32.mrf.mxu3  ;;  %v1269_v10 = vadd.f32 %v1250_v38, %v1184_v47 }
 0x264   : > { %v1168_v49 = vpop.f32.mrf.mxu1  ;;  %v1188_v26 = vadd.f32 %v2463_v30, %v2448_v14 }
 0x265   : > { %v1185_v55 = vadd.f32 %v1168_v49, %v2440_v57 }
 0x26a   : > { %v1253_v46 = vpop.f32.mrf.mxu2 }
 0x26b   : > { %v1178_v33 = vpop.f32.mrf.mxu3  ;;  %v1270_v59 = vadd.f32 %v1253_v46, %v1185_v55 }
 0x26c   : > { %v2471_v34 = vadd.f32 %v1178_v33, %v1103_v20  ;;  %v1170_v54 = vpop.f32.mrf.mxu1 }
 0x26d   : > { %v1186_v3 = vadd.f32 %v1170_v54, %v2444_v0 }
 0x272   : > { %v1255_v53 = vpop.f32.mrf.mxu2 }
 0x273   : > { %v2476_v39 = vpop.f32.mrf.mxu3  ;;  %v1271_v57 = vadd.f32 %v1255_v53, %v1186_v3 }
 0x27a   : > { %v1258_v11 = vpop.f32.mrf.mxu2 }
 0x27b   : > { %v1333_v42 = vpop.f32.mrf.mxu3  ;;  %v1272_v18 = vadd.f32 %v1258_v11, %v1187_v28 }
 0x27c   : > { %v1353_v43 = vadd.f32 %v1333_v42, %v1268_v6 }
 0x27e   : > { %v1365_v48 = vadd.f32 %v2482_v45, %v1353_v43 }
 0x280   : > { %v1373_v51 = vmax.f32 %v1365_v48, 0.0  ;;  %v1190_v48 = vadd.f32 %v2476_v39, %v2458_v8 }
 0x282   : > { %v1381_v21 = vpack.c.bf16 %v1373_v51, %v1373_v51  ;;  %v1260_v9 = vpop.f32.mrf.mxu2 }
 0x283   : > { %v1335_v50 = vpop.f32.mrf.mxu3  ;;  %v1273_v37 = vadd.f32 %v1260_v9, %v1188_v26 }
 0x284   : > { %v1354_v52 = vadd.f32 %v1335_v50, %v1269_v10  ;;  %v1420_v63 = vunpack.c.l.b16 %v1381_v21 }
 0x286   : > { %v1366_v32 = vadd.f32 %v2482_v45, %v1354_v52 }
 0x288   : > { %v1374_v58 = vmax.f32 %v1366_v32, 0.0 }
 0x289   : > { %v1457_v43 = vpop.permute.xlu1 %1456 }
 0x28a   : > { %v1382_v61 = vpack.c.bf16 %v1374_v58, %v1374_v58  ;;  %v1263_v33 = vpop.f32.mrf.mxu2 }
 0x28b   : > { %v1338_v62 = vpop.f32.mrf.mxu3  ;;  %v1274_v40 = vadd.f32 %v1263_v33, %v2471_v34 }
 0x28c   : > { %v1421_v1 = vunpack.c.l.b16 %v1382_v61  ;;  %v1355_v5 = vadd.f32 %v1338_v62, %v1270_v59  ;;  %v1972_v62 = vld [vmem:[%s2564_s6] ss:$0 sm:$0xff] }
 0x28e   : > { %v1428_v2 = vpack.c.b16 %v1421_v1, %v1420_v63  ;;  %v1367_v4 = vadd.f32 %v2482_v45, %v1355_v5 }
 0x290   : > { %v1462_v7 = vsel %vm532_vm1, %v1428_v2, %v1453_v56  ;;  %v1375_v13 = vmax.f32 %v1367_v4, 0.0 }
 0x291   : > { %1882 = vmatmul.msk.bf16.vlgmr.msrb.gmra.mxu1 %vm1524_vm4, %v1462_v7  ;;  %v1459_v8 = vpop.permute.xlu1 %1458 }
 0x292   : > { %v1383_v16 = vpack.c.bf16 %v1375_v13, %v1375_v13  ;;  %v1265_v47 = vpop.f32.mrf.mxu2 }
 0x293   : > { %v1340_v12 = vpop.f32.mrf.mxu3  ;;  %v1275_v50 = vadd.f32 %v1265_v47, %v1190_v48 }
 0x294   : > { %v1356_v60 = vadd.f32 %v1340_v12, %v1271_v57  ;;  %v1422_v0 = vunpack.c.l.b16 %v1383_v16 }
 0x296   : > { %v1368_v15 = vadd.f32 %v2482_v45, %v1356_v60 }
 0x298   : > { %v1376_v17 = vmax.f32 %v1368_v15, 0.0 }
 0x29a   : > { %v1384_v20 = vpack.c.bf16 %v1376_v17, %v1376_v17 }
 0x29b   : > { %v1343_v22 = vpop.f32.mrf.mxu3 }
 0x29c   : > { %v1423_v19 = vunpack.c.l.b16 %v1384_v20  ;;  %v1357_v23 = vadd.f32 %v1343_v22, %v1272_v18 }
 0x29e   : > { %v1429_v25 = vpack.c.b16 %v1423_v19, %v1422_v0  ;;  %v1369_v27 = vadd.f32 %v2482_v45, %v1357_v23 }
 0x2a0   : > { %v1465_v29 = vsel %vm532_vm1, %v1429_v25, %v1455_v24  ;;  %v1377_v28 = vmax.f32 %v1369_v27, 0.0 }
 0x2a1   : > { %1883 = vmatmul.msk.bf16.gmra.mxu1 %vm1524_vm4, %v1465_v29 }
 0x2a2   : > { %v1385_v36 = vpack.c.bf16 %v1377_v28, %v1377_v28 }
 0x2a3   : > { %v1345_v31 = vpop.f32.mrf.mxu3 }
 0x2a4   : > { %v1358_v44 = vadd.f32 %v1345_v31, %v1273_v37  ;;  %v1424_v14 = vunpack.c.l.b16 %v1385_v36 }
 0x2a6   : > { %v1370_v35 = vadd.f32 %v2482_v45, %v1358_v44 }
 0x2a8   : > { %v1378_v38 = vmax.f32 %v1370_v35, 0.0 }
 0x2aa   : > { %v1386_v41 = vpack.c.bf16 %v1378_v38, %v1378_v38 }
 0x2ab   : > { %v1348_v6 = vpop.f32.mrf.mxu3 }
 0x2ac   : > { %v1425_v30 = vunpack.c.l.b16 %v1386_v41  ;;  %v1359_v42 = vadd.f32 %v1348_v6, %v1274_v40 }
 0x2ae   : > { %v1430_v46 = vpack.c.b16 %v1425_v30, %v1424_v14  ;;  %v1371_v10 = vadd.f32 %v2482_v45, %v1359_v42 }
 0x2b0   : > { %v1468_v49 = vsel %vm532_vm1, %v1430_v46, %v1457_v43  ;;  %v1379_v51 = vmax.f32 %v1371_v10, 0.0 }
 0x2b1   : > { %1884 = vmatmul.msk.bf16.gmra.mxu1 %vm1524_vm4, %v1468_v49 }
 0x2b2   : > { %v1387_v53 = vpack.c.bf16 %v1379_v51, %v1379_v51 }
 0x2b3   : > { %v1350_v34 = vpop.f32.mrf.mxu3 }
 0x2b4   : > { %v1360_v52 = vadd.f32 %v1350_v34, %v1275_v50  ;;  %v1426_v58 = vunpack.c.l.b16 %v1387_v53 }
 0x2b6   : > { %v1372_v32 = vadd.f32 %v2482_v45, %v1360_v52 }
 0x2b8   : > { %v1380_v55 = vmax.f32 %v1372_v32, 0.0 }
 0x2ba   : > { %v1388_v21 = vpack.c.bf16 %v1380_v55, %v1380_v55 }
 0x2bc   : > { %v1427_v59 = vunpack.c.l.b16 %v1388_v21 }
 0x2be   : > { %v1431_v39 = vpack.c.b16 %v1427_v59, %v1426_v58 }
 0x2c0   : > { %v1471_v61 = vsel %vm532_vm1, %v1431_v39, %v1459_v8 }
 0x2c1   : > { %1885 = vmatmul.msk.bf16.gmra.mxu1 %vm1524_vm4, %v1471_v61 }
 0x30e   : > { %v1542_v63 = vpop.f32.mrf.mxu1 }
 0x30f   : > { %v1543_v45 = vadd.f32 %v1972_v62, %v1542_v63 }
 0x311   : > { %v1562_v1 = vmax.f32 %v1543_v45, 0.0 }
 0x313   : > { %1570 = vst [vmem:[%s2514_s15] sm:$0xff] %v1562_v1 }
 0x316   : > { %v1544_v5 = vpop.f32.mrf.mxu1 }
 0x317   : > { %v1545_v54 = vadd.f32 %v1972_v62, %v1544_v5 }
 0x319   : > { %v1563_v56 = vmax.f32 %v1545_v54, 0.0 }
 0x31b   : > { %1571 = vst [vmem:[%s2514_s15 + $0x8] sm:$0xff] %v1563_v56 }
 0x31e   : > { %v1547_v2 = vpop.f32.mrf.mxu1 }
 0x31f   : > { %v1548_v3 = vadd.f32 %v1972_v62, %v1547_v2 }
 0x321   : > { %v1564_v4 = vmax.f32 %v1548_v3, 0.0 }
 0x323   : > { %1572 = vst [vmem:[%s2514_s15 + $0x10] sm:$0xff] %v1564_v4 }
 0x326   : > { %v1549_v7 = vpop.f32.mrf.mxu1 }
 0x327   : > { %v1550_v11 = vadd.f32 %v1972_v62, %v1549_v7 }
 0x329   : > { %v1565_v57 = vmax.f32 %v1550_v11, 0.0 }
 0x32b   : > { %1573 = vst [vmem:[%s2514_s15 + $0x18] sm:$0xff] %v1565_v57 }
 0x32e   : > { %v1552_v12 = vpop.f32.mrf.mxu1 }
 0x32f   : > { %v1553_v13 = vadd.f32 %v1972_v62, %v1552_v12 }
 0x331   : > { %v1566_v60 = vmax.f32 %v1553_v13, 0.0 }
 0x333   : > { %1574 = vst [vmem:[%s2514_s15 + $0x20] sm:$0xff] %v1566_v60 }
 0x336   : > { %v1554_v15 = vpop.f32.mrf.mxu1 }
 0x337   : > { %v1555_v16 = vadd.f32 %v1972_v62, %v1554_v15 }
 0x339   : > { %v1567_v17 = vmax.f32 %v1555_v16, 0.0 }
 0x33b   : > { %1575 = vst [vmem:[%s2514_s15 + $0x28] sm:$0xff] %v1567_v17 }
 0x33e   : > { %v1557_v18 = vpop.f32.mrf.mxu1 }
 0x33f   : > { %v1558_v20 = vadd.f32 %v1972_v62, %v1557_v18 }
 0x341   : > { %v1568_v9 = vmax.f32 %v1558_v20, 0.0 }
 0x343   : > { %1576 = vst [vmem:[%s2514_s15 + $0x30] sm:$0xff] %v1568_v9 }
 0x346   : > { %v1559_v22 = vpop.f32.mrf.mxu1 }
 0x347   : > { %v1560_v0 = vadd.f32 %v1972_v62, %v1559_v22 }
 0x349   : > { %v1569_v19 = vmax.f32 %v1560_v0, 0.0 }
 0x34b   : > { %1577 = vst [vmem:[%s2514_s15 + $0x38] sm:$0xff] %v1569_v19 }
 0x34c   : > { %2000 = shalt.err (!%p1997_p3)
}
 0x34d   : > { %s2039_s23 = smov 128   ;;  %s2040_s15 = smov 8  }
 0x34e   : > { %1927 = dma.vmem_to_hbm [thread:$0]  (%p2119_p5), %s1592_s20, 1024, %s1594_s21, %s1579_s22, %s2039_s23, %s2039_s23, %s2040_s15  }
 0x34f PF: > { %p1933_p4 = scmp.ge.s32.totalorder %s2035_s27, 2  ;;  %s1608_s17 = sand.u32 1, %s2023_s24  }
 0x350   : > { %s1609_s18 = scalar_lea.sflag [#allocation4], %s1608_s17 }
 0x351   : > { %p1930_p7 = pnand %p1933_p4, %p2123_p6 }
 0x353   : > { %p1931_p8 = pneg %p1930_p7 }
 0x355   : > { %2018 = dma.done.wait (%p1931_p8), %s1609_s18, 1024  }
 0x356   : > { %2020 = vsyncadd (%p1931_p8), %s1609_s18, 4294966272  ;;  %p17_p9 = scmp.ge.s32.totalorder %s2106_s30, 4   ;;  %s2568_s24 = smov %s2027_s25 }
 0x357   : > { %s2569_s25 = smov %s2031_s26  ;;  %s2570_s26 = smov %s2117_s10 }
 0x358   : > { %s2571_s27 = smov %s2106_s30  ;;  %19 = sbr.rel (!%p17_p9) target bundleno = 3 (0x3), region = 165 }
 0x35d   :  { %1615 = vsyncpa [#allocation4], 1 }
 0x35e   :  { %1617 = vsyncpa [#allocation4 + $0x1], 1 }

</bundles_post_ra>
